<compile_context>
chip_gen: v6e
topology: v6e:2x2x1
jax: 0.10.0
libtpu: 0.0.40
codegen_flags: <defaults>
</compile_context>

<pallas_src>
import functools

import jax
import jax.numpy as jnp
import numpy as np
from jax import lax
from jax.experimental import pallas as pl
from jax.experimental.pallas import tpu as pltpu


def cbow_kernel(ctx_sref, t_sref, in_emb_ref, out_emb_ref, out_ref,
                *, C, T, T_pad, TB):
    """One grid step computes TB batch rows of the (B, T_pad) output."""
    tile = pl.program_id(0)
    lane_iota = lax.broadcasted_iota(jnp.int32, (1, T_pad), 1)   # lane-major

    rows = []
    for r in range(TB):                       # TB is static & small -> unroll
        b = tile * TB + r

        # ---- bag-of-words sum: sum_c in_emb[contexts[b, c], :] ------------
        sum_emb = in_emb_ref[pl.ds(ctx_sref[b * C + 0], 1), :]   # (1, H)
        for c in range(1, C):                 # C static & tiny
            sum_emb = sum_emb + in_emb_ref[pl.ds(ctx_sref[b * C + c], 1), :]

        # ---- only the T target dot products (no full-vocab scores) --------
        row = jnp.zeros((1, T_pad), jnp.float32)
        for j in range(T):                    # T static & tiny
            out_row = out_emb_ref[pl.ds(t_sref[b * T + j], 1), :]  # (1, H)
            val = jnp.sum(sum_emb * out_row, axis=-1, keepdims=True)  # (1, 1)
            row = jnp.where(lane_iota == j, val, row)
        rows.append(row)

    # Single lane- and sublane-dense store of the whole (TB, T_pad) block.
    out_ref[...] = jnp.concatenate(rows, axis=0)


def cbow_forward(contexts, t, in_emb, out_emb, *, tb=8):
    """Pallas equivalent of CbowModel.forward. Returns (B, 1, T) float32."""
    B, C = contexts.shape
    _, T = t.shape
    V, H = in_emb.shape

    T_pad = ((T + 127) // 128) * 128          # lane-dense output width
    B_pad = ((B + tb - 1) // tb) * tb         # whole batch tiles

    # Pad the index arrays (padded rows use valid id 0; results discarded)
    # and flatten to 1-D for compact SMEM scalar prefetch.
    ctx_flat = (jnp.zeros((B_pad, C), jnp.int32)
                .at[:B].set(contexts.astype(jnp.int32)).reshape(-1))
    t_flat = (jnp.zeros((B_pad, T), jnp.int32)
              .at[:B].set(t.astype(jnp.int32)).reshape(-1))

    kernel = functools.partial(cbow_kernel, C=C, T=T, T_pad=T_pad, TB=tb)

    grid_spec = pltpu.PrefetchScalarGridSpec(
        num_scalar_prefetch=2,
        grid=(B_pad // tb,),
        in_specs=[
            pl.BlockSpec((V, H), lambda i, ctx, tt: (0, 0)),   # in_emb  (resident)
            pl.BlockSpec((V, H), lambda i, ctx, tt: (0, 0)),   # out_emb (resident)
        ],
        out_specs=pl.BlockSpec((tb, T_pad), lambda i, ctx, tt: (i, 0)),
    )

    y_pad = pl.pallas_call(
        kernel,
        out_shape=jax.ShapeDtypeStruct((B_pad, T_pad), jnp.float32),
        grid_spec=grid_spec,
        compiler_params=pltpu.CompilerParams(
            dimension_semantics=("parallel",),
            vmem_limit_bytes=64 * 1024 * 1024,
        ),
    )(ctx_flat, t_flat,
      in_emb.astype(jnp.float32), out_emb.astype(jnp.float32))

    # Un-pad and restore the PyTorch (B, 1, T) layout.
    return y_pad[:B, :T].reshape(B, 1, T)


def cbow_reference(contexts, t, in_emb, out_emb):
    """Pure-JAX mirror of the PyTorch forward, for verification."""
    con_emb = in_emb[contexts].sum(axis=1, keepdims=True)       # (B, 1, H)
    target_emb = jnp.swapaxes(out_emb[t], 1, 2)                 # (B, H, T)
    return jnp.matmul(con_emb, target_emb)                      # (B, 1, T)


if __name__ == "__main__":
    # Small deterministic shapes consistent with the module.
    vocab_size = 16
    hidden_size = 8
    batch = 2
    context_len = 4   # CBOW context window (e.g. 2 words each side)
    num_targets = 3   # e.g. 1 positive + 2 negative samples

    key = jax.random.PRNGKey(0)
    k_in, k_out, k_ctx, k_t = jax.random.split(key, 4)

    # nn.Embedding default init ~ N(0, 1)
    in_emb = jax.random.normal(k_in, (vocab_size, hidden_size), jnp.float32)
    out_emb = jax.random.normal(k_out, (vocab_size, hidden_size), jnp.float32)

    contexts = jax.random.randint(k_ctx, (batch, context_len), 0, vocab_size,
                                  dtype=jnp.int32)
    t = jax.random.randint(k_t, (batch, num_targets), 0, vocab_size,
                           dtype=jnp.int32)

    y = cbow_forward(contexts, t, in_emb, out_emb)
    y = jax.block_until_ready(y)

    y_ref = cbow_reference(contexts, t, in_emb, out_emb)
    np.testing.assert_allclose(np.asarray(y), np.asarray(y_ref),
                               rtol=1e-5, atol=1e-5)

    print("KERNEL_OK")
</pallas_src>

<mosaic_0001>
module attributes {stable_mosaic.version = 11 : i64} {
  func.func @cbow_kernel(%arg0: i32, %arg1: memref<32xi32, #tpu.memory_space<smem>>, %arg2: memref<24xi32, #tpu.memory_space<smem>>, %arg3: memref<16x8xf32, #tpu.memory_space<vmem>>, %arg4: memref<16x8xf32, #tpu.memory_space<vmem>>, %arg5: memref<8x128xf32, #tpu.memory_space<vmem>>) attributes {dimension_semantics = [#tpu.dimension_semantics<parallel>], iteration_bounds = array<i64: 1>, scalar_prefetch = 2 : i64, scratch_operands = 0 : i64, tpu.core_type = #tpu.core_type<tc>, window_params = [{pipeline_mode = #tpu.pipeline_mode<synchronous>, transform_indices = @transform_0, window_bounds = array<i64: 16, 8>}, {pipeline_mode = #tpu.pipeline_mode<synchronous>, transform_indices = @transform_1, window_bounds = array<i64: 16, 8>}, {transform_indices = @transform_2, window_bounds = array<i64: 8, 128>}]} {
    %0 = tpu.iota {dimensions = array<i32: 1>} : vector<1x128xi32>
    %c8_i32 = arith.constant 8 : i32
    %1 = arith.muli %arg0, %c8_i32 : i32
    %c0_i32 = arith.constant 0 : i32
    %2 = arith.addi %1, %c0_i32 : i32
    %c4_i32 = arith.constant 4 : i32
    %3 = arith.muli %2, %c4_i32 : i32
    %c0_i32_0 = arith.constant 0 : i32
    %4 = arith.addi %3, %c0_i32_0 : i32
    %5 = arith.index_cast %4 : i32 to index
    %6 = memref.load %arg1[%5] : memref<32xi32, #tpu.memory_space<smem>>
    %7 = arith.index_cast %6 : i32 to index
    %c0 = arith.constant 0 : index
    %8 = vector.load %arg3[%7, %c0] : memref<16x8xf32, #tpu.memory_space<vmem>>, vector<1x8xf32>
    %c4_i32_1 = arith.constant 4 : i32
    %9 = arith.muli %2, %c4_i32_1 : i32
    %c1_i32 = arith.constant 1 : i32
    %10 = arith.addi %9, %c1_i32 : i32
    %11 = arith.index_cast %10 : i32 to index
    %12 = memref.load %arg1[%11] : memref<32xi32, #tpu.memory_space<smem>>
    %13 = arith.index_cast %12 : i32 to index
    %c0_2 = arith.constant 0 : index
    %14 = vector.load %arg3[%13, %c0_2] : memref<16x8xf32, #tpu.memory_space<vmem>>, vector<1x8xf32>
    %15 = arith.addf %8, %14 : vector<1x8xf32>
    %c4_i32_3 = arith.constant 4 : i32
    %16 = arith.muli %2, %c4_i32_3 : i32
    %c2_i32 = arith.constant 2 : i32
    %17 = arith.addi %16, %c2_i32 : i32
    %18 = arith.index_cast %17 : i32 to index
    %19 = memref.load %arg1[%18] : memref<32xi32, #tpu.memory_space<smem>>
    %20 = arith.index_cast %19 : i32 to index
    %c0_4 = arith.constant 0 : index
    %21 = vector.load %arg3[%20, %c0_4] : memref<16x8xf32, #tpu.memory_space<vmem>>, vector<1x8xf32>
    %22 = arith.addf %15, %21 : vector<1x8xf32>
    %c4_i32_5 = arith.constant 4 : i32
    %23 = arith.muli %2, %c4_i32_5 : i32
    %c3_i32 = arith.constant 3 : i32
    %24 = arith.addi %23, %c3_i32 : i32
    %25 = arith.index_cast %24 : i32 to index
    %26 = memref.load %arg1[%25] : memref<32xi32, #tpu.memory_space<smem>>
    %27 = arith.index_cast %26 : i32 to index
    %c0_6 = arith.constant 0 : index
    %28 = vector.load %arg3[%27, %c0_6] : memref<16x8xf32, #tpu.memory_space<vmem>>, vector<1x8xf32>
    %29 = arith.addf %22, %28 : vector<1x8xf32>
    %cst = arith.constant 0.000000e+00 : f32
    %30 = vector.broadcast %cst : f32 to vector<1x128xf32>
    %c3_i32_7 = arith.constant 3 : i32
    %31 = arith.muli %2, %c3_i32_7 : i32
    %c0_i32_8 = arith.constant 0 : i32
    %32 = arith.addi %31, %c0_i32_8 : i32
    %33 = arith.index_cast %32 : i32 to index
    %34 = memref.load %arg2[%33] : memref<24xi32, #tpu.memory_space<smem>>
    %35 = arith.index_cast %34 : i32 to index
    %c0_9 = arith.constant 0 : index
    %36 = vector.load %arg4[%35, %c0_9] : memref<16x8xf32, #tpu.memory_space<vmem>>, vector<1x8xf32>
    %37 = arith.mulf %29, %36 : vector<1x8xf32>
    %cst_10 = arith.constant dense<0.000000e+00> : vector<1xf32>
    %38 = vector.multi_reduction <add>, %37, %cst_10 [1] : vector<1x8xf32> to vector<1xf32>
    %39 = vector.shape_cast %38 : vector<1xf32> to vector<1x1xf32>
    %c0_i32_11 = arith.constant 0 : i32
    %40 = vector.broadcast %c0_i32_11 : i32 to vector<1x128xi32>
    %41 = arith.cmpi eq, %0, %40 : vector<1x128xi32>
    %42 = vector.shape_cast %39 : vector<1x1xf32> to vector<1x1xf32>
    %43 = vector.broadcast %42 : vector<1x1xf32> to vector<1x128xf32>
    %44 = arith.select %41, %43, %30 : vector<1x128xi1>, vector<1x128xf32>
    %c3_i32_12 = arith.constant 3 : i32
    %45 = arith.muli %2, %c3_i32_12 : i32
    %c1_i32_13 = arith.constant 1 : i32
    %46 = arith.addi %45, %c1_i32_13 : i32
    %47 = arith.index_cast %46 : i32 to index
    %48 = memref.load %arg2[%47] : memref<24xi32, #tpu.memory_space<smem>>
    %49 = arith.index_cast %48 : i32 to index
    %c0_14 = arith.constant 0 : index
    %50 = vector.load %arg4[%49, %c0_14] : memref<16x8xf32, #tpu.memory_space<vmem>>, vector<1x8xf32>
    %51 = arith.mulf %29, %50 : vector<1x8xf32>
    %cst_15 = arith.constant dense<0.000000e+00> : vector<1xf32>
    %52 = vector.multi_reduction <add>, %51, %cst_15 [1] : vector<1x8xf32> to vector<1xf32>
    %53 = vector.shape_cast %52 : vector<1xf32> to vector<1x1xf32>
    %c1_i32_16 = arith.constant 1 : i32
    %54 = vector.broadcast %c1_i32_16 : i32 to vector<1x128xi32>
    %55 = arith.cmpi eq, %0, %54 : vector<1x128xi32>
    %56 = vector.shape_cast %53 : vector<1x1xf32> to vector<1x1xf32>
    %57 = vector.broadcast %56 : vector<1x1xf32> to vector<1x128xf32>
    %58 = arith.select %55, %57, %44 : vector<1x128xi1>, vector<1x128xf32>
    %c3_i32_17 = arith.constant 3 : i32
    %59 = arith.muli %2, %c3_i32_17 : i32
    %c2_i32_18 = arith.constant 2 : i32
    %60 = arith.addi %59, %c2_i32_18 : i32
    %61 = arith.index_cast %60 : i32 to index
    %62 = memref.load %arg2[%61] : memref<24xi32, #tpu.memory_space<smem>>
    %63 = arith.index_cast %62 : i32 to index
    %c0_19 = arith.constant 0 : index
    %64 = vector.load %arg4[%63, %c0_19] : memref<16x8xf32, #tpu.memory_space<vmem>>, vector<1x8xf32>
    %65 = arith.mulf %29, %64 : vector<1x8xf32>
    %cst_20 = arith.constant dense<0.000000e+00> : vector<1xf32>
    %66 = vector.multi_reduction <add>, %65, %cst_20 [1] : vector<1x8xf32> to vector<1xf32>
    %67 = vector.shape_cast %66 : vector<1xf32> to vector<1x1xf32>
    %c2_i32_21 = arith.constant 2 : i32
    %68 = vector.broadcast %c2_i32_21 : i32 to vector<1x128xi32>
    %69 = arith.cmpi eq, %0, %68 : vector<1x128xi32>
    %70 = vector.shape_cast %67 : vector<1x1xf32> to vector<1x1xf32>
    %71 = vector.broadcast %70 : vector<1x1xf32> to vector<1x128xf32>
    %72 = arith.select %69, %71, %58 : vector<1x128xi1>, vector<1x128xf32>
    %c8_i32_22 = arith.constant 8 : i32
    %73 = arith.muli %arg0, %c8_i32_22 : i32
    %c1_i32_23 = arith.constant 1 : i32
    %74 = arith.addi %73, %c1_i32_23 : i32
    %c4_i32_24 = arith.constant 4 : i32
    %75 = arith.muli %74, %c4_i32_24 : i32
    %c0_i32_25 = arith.constant 0 : i32
    %76 = arith.addi %75, %c0_i32_25 : i32
    %77 = arith.index_cast %76 : i32 to index
    %78 = memref.load %arg1[%77] : memref<32xi32, #tpu.memory_space<smem>>
    %79 = arith.index_cast %78 : i32 to index
    %c0_26 = arith.constant 0 : index
    %80 = vector.load %arg3[%79, %c0_26] : memref<16x8xf32, #tpu.memory_space<vmem>>, vector<1x8xf32>
    %c4_i32_27 = arith.constant 4 : i32
    %81 = arith.muli %74, %c4_i32_27 : i32
    %c1_i32_28 = arith.constant 1 : i32
    %82 = arith.addi %81, %c1_i32_28 : i32
    %83 = arith.index_cast %82 : i32 to index
    %84 = memref.load %arg1[%83] : memref<32xi32, #tpu.memory_space<smem>>
    %85 = arith.index_cast %84 : i32 to index
    %c0_29 = arith.constant 0 : index
    %86 = vector.load %arg3[%85, %c0_29] : memref<16x8xf32, #tpu.memory_space<vmem>>, vector<1x8xf32>
    %87 = arith.addf %80, %86 : vector<1x8xf32>
    %c4_i32_30 = arith.constant 4 : i32
    %88 = arith.muli %74, %c4_i32_30 : i32
    %c2_i32_31 = arith.constant 2 : i32
    %89 = arith.addi %88, %c2_i32_31 : i32
    %90 = arith.index_cast %89 : i32 to index
    %91 = memref.load %arg1[%90] : memref<32xi32, #tpu.memory_space<smem>>
    %92 = arith.index_cast %91 : i32 to index
    %c0_32 = arith.constant 0 : index
    %93 = vector.load %arg3[%92, %c0_32] : memref<16x8xf32, #tpu.memory_space<vmem>>, vector<1x8xf32>
    %94 = arith.addf %87, %93 : vector<1x8xf32>
    %c4_i32_33 = arith.constant 4 : i32
    %95 = arith.muli %74, %c4_i32_33 : i32
    %c3_i32_34 = arith.constant 3 : i32
    %96 = arith.addi %95, %c3_i32_34 : i32
    %97 = arith.index_cast %96 : i32 to index
    %98 = memref.load %arg1[%97] : memref<32xi32, #tpu.memory_space<smem>>
    %99 = arith.index_cast %98 : i32 to index
    %c0_35 = arith.constant 0 : index
    %100 = vector.load %arg3[%99, %c0_35] : memref<16x8xf32, #tpu.memory_space<vmem>>, vector<1x8xf32>
    %101 = arith.addf %94, %100 : vector<1x8xf32>
    %cst_36 = arith.constant 0.000000e+00 : f32
    %102 = vector.broadcast %cst_36 : f32 to vector<1x128xf32>
    %c3_i32_37 = arith.constant 3 : i32
    %103 = arith.muli %74, %c3_i32_37 : i32
    %c0_i32_38 = arith.constant 0 : i32
    %104 = arith.addi %103, %c0_i32_38 : i32
    %105 = arith.index_cast %104 : i32 to index
    %106 = memref.load %arg2[%105] : memref<24xi32, #tpu.memory_space<smem>>
    %107 = arith.index_cast %106 : i32 to index
    %c0_39 = arith.constant 0 : index
    %108 = vector.load %arg4[%107, %c0_39] : memref<16x8xf32, #tpu.memory_space<vmem>>, vector<1x8xf32>
    %109 = arith.mulf %101, %108 : vector<1x8xf32>
    %cst_40 = arith.constant dense<0.000000e+00> : vector<1xf32>
    %110 = vector.multi_reduction <add>, %109, %cst_40 [1] : vector<1x8xf32> to vector<1xf32>
    %111 = vector.shape_cast %110 : vector<1xf32> to vector<1x1xf32>
    %c0_i32_41 = arith.constant 0 : i32
    %112 = vector.broadcast %c0_i32_41 : i32 to vector<1x128xi32>
    %113 = arith.cmpi eq, %0, %112 : vector<1x128xi32>
    %114 = vector.shape_cast %111 : vector<1x1xf32> to vector<1x1xf32>
    %115 = vector.broadcast %114 : vector<1x1xf32> to vector<1x128xf32>
    %116 = arith.select %113, %115, %102 : vector<1x128xi1>, vector<1x128xf32>
    %c3_i32_42 = arith.constant 3 : i32
    %117 = arith.muli %74, %c3_i32_42 : i32
    %c1_i32_43 = arith.constant 1 : i32
    %118 = arith.addi %117, %c1_i32_43 : i32
    %119 = arith.index_cast %118 : i32 to index
    %120 = memref.load %arg2[%119] : memref<24xi32, #tpu.memory_space<smem>>
    %121 = arith.index_cast %120 : i32 to index
    %c0_44 = arith.constant 0 : index
    %122 = vector.load %arg4[%121, %c0_44] : memref<16x8xf32, #tpu.memory_space<vmem>>, vector<1x8xf32>
    %123 = arith.mulf %101, %122 : vector<1x8xf32>
    %cst_45 = arith.constant dense<0.000000e+00> : vector<1xf32>
    %124 = vector.multi_reduction <add>, %123, %cst_45 [1] : vector<1x8xf32> to vector<1xf32>
    %125 = vector.shape_cast %124 : vector<1xf32> to vector<1x1xf32>
    %c1_i32_46 = arith.constant 1 : i32
    %126 = vector.broadcast %c1_i32_46 : i32 to vector<1x128xi32>
    %127 = arith.cmpi eq, %0, %126 : vector<1x128xi32>
    %128 = vector.shape_cast %125 : vector<1x1xf32> to vector<1x1xf32>
    %129 = vector.broadcast %128 : vector<1x1xf32> to vector<1x128xf32>
    %130 = arith.select %127, %129, %116 : vector<1x128xi1>, vector<1x128xf32>
    %c3_i32_47 = arith.constant 3 : i32
    %131 = arith.muli %74, %c3_i32_47 : i32
    %c2_i32_48 = arith.constant 2 : i32
    %132 = arith.addi %131, %c2_i32_48 : i32
    %133 = arith.index_cast %132 : i32 to index
    %134 = memref.load %arg2[%133] : memref<24xi32, #tpu.memory_space<smem>>
    %135 = arith.index_cast %134 : i32 to index
    %c0_49 = arith.constant 0 : index
    %136 = vector.load %arg4[%135, %c0_49] : memref<16x8xf32, #tpu.memory_space<vmem>>, vector<1x8xf32>
    %137 = arith.mulf %101, %136 : vector<1x8xf32>
    %cst_50 = arith.constant dense<0.000000e+00> : vector<1xf32>
    %138 = vector.multi_reduction <add>, %137, %cst_50 [1] : vector<1x8xf32> to vector<1xf32>
    %139 = vector.shape_cast %138 : vector<1xf32> to vector<1x1xf32>
    %c2_i32_51 = arith.constant 2 : i32
    %140 = vector.broadcast %c2_i32_51 : i32 to vector<1x128xi32>
    %141 = arith.cmpi eq, %0, %140 : vector<1x128xi32>
    %142 = vector.shape_cast %139 : vector<1x1xf32> to vector<1x1xf32>
    %143 = vector.broadcast %142 : vector<1x1xf32> to vector<1x128xf32>
    %144 = arith.select %141, %143, %130 : vector<1x128xi1>, vector<1x128xf32>
    %c8_i32_52 = arith.constant 8 : i32
    %145 = arith.muli %arg0, %c8_i32_52 : i32
    %c2_i32_53 = arith.constant 2 : i32
    %146 = arith.addi %145, %c2_i32_53 : i32
    %c4_i32_54 = arith.constant 4 : i32
    %147 = arith.muli %146, %c4_i32_54 : i32
    %c0_i32_55 = arith.constant 0 : i32
    %148 = arith.addi %147, %c0_i32_55 : i32
    %149 = arith.index_cast %148 : i32 to index
    %150 = memref.load %arg1[%149] : memref<32xi32, #tpu.memory_space<smem>>
    %151 = arith.index_cast %150 : i32 to index
    %c0_56 = arith.constant 0 : index
    %152 = vector.load %arg3[%151, %c0_56] : memref<16x8xf32, #tpu.memory_space<vmem>>, vector<1x8xf32>
    %c4_i32_57 = arith.constant 4 : i32
    %153 = arith.muli %146, %c4_i32_57 : i32
    %c1_i32_58 = arith.constant 1 : i32
    %154 = arith.addi %153, %c1_i32_58 : i32
    %155 = arith.index_cast %154 : i32 to index
    %156 = memref.load %arg1[%155] : memref<32xi32, #tpu.memory_space<smem>>
    %157 = arith.index_cast %156 : i32 to index
    %c0_59 = arith.constant 0 : index
    %158 = vector.load %arg3[%157, %c0_59] : memref<16x8xf32, #tpu.memory_space<vmem>>, vector<1x8xf32>
    %159 = arith.addf %152, %158 : vector<1x8xf32>
    %c4_i32_60 = arith.constant 4 : i32
    %160 = arith.muli %146, %c4_i32_60 : i32
    %c2_i32_61 = arith.constant 2 : i32
    %161 = arith.addi %160, %c2_i32_61 : i32
    %162 = arith.index_cast %161 : i32 to index
    %163 = memref.load %arg1[%162] : memref<32xi32, #tpu.memory_space<smem>>
    %164 = arith.index_cast %163 : i32 to index
    %c0_62 = arith.constant 0 : index
    %165 = vector.load %arg3[%164, %c0_62] : memref<16x8xf32, #tpu.memory_space<vmem>>, vector<1x8xf32>
    %166 = arith.addf %159, %165 : vector<1x8xf32>
    %c4_i32_63 = arith.constant 4 : i32
    %167 = arith.muli %146, %c4_i32_63 : i32
    %c3_i32_64 = arith.constant 3 : i32
    %168 = arith.addi %167, %c3_i32_64 : i32
    %169 = arith.index_cast %168 : i32 to index
    %170 = memref.load %arg1[%169] : memref<32xi32, #tpu.memory_space<smem>>
    %171 = arith.index_cast %170 : i32 to index
    %c0_65 = arith.constant 0 : index
    %172 = vector.load %arg3[%171, %c0_65] : memref<16x8xf32, #tpu.memory_space<vmem>>, vector<1x8xf32>
    %173 = arith.addf %166, %172 : vector<1x8xf32>
    %cst_66 = arith.constant 0.000000e+00 : f32
    %174 = vector.broadcast %cst_66 : f32 to vector<1x128xf32>
    %c3_i32_67 = arith.constant 3 : i32
    %175 = arith.muli %146, %c3_i32_67 : i32
    %c0_i32_68 = arith.constant 0 : i32
    %176 = arith.addi %175, %c0_i32_68 : i32
    %177 = arith.index_cast %176 : i32 to index
    %178 = memref.load %arg2[%177] : memref<24xi32, #tpu.memory_space<smem>>
    %179 = arith.index_cast %178 : i32 to index
    %c0_69 = arith.constant 0 : index
    %180 = vector.load %arg4[%179, %c0_69] : memref<16x8xf32, #tpu.memory_space<vmem>>, vector<1x8xf32>
    %181 = arith.mulf %173, %180 : vector<1x8xf32>
    %cst_70 = arith.constant dense<0.000000e+00> : vector<1xf32>
    %182 = vector.multi_reduction <add>, %181, %cst_70 [1] : vector<1x8xf32> to vector<1xf32>
    %183 = vector.shape_cast %182 : vector<1xf32> to vector<1x1xf32>
    %c0_i32_71 = arith.constant 0 : i32
    %184 = vector.broadcast %c0_i32_71 : i32 to vector<1x128xi32>
    %185 = arith.cmpi eq, %0, %184 : vector<1x128xi32>
    %186 = vector.shape_cast %183 : vector<1x1xf32> to vector<1x1xf32>
    %187 = vector.broadcast %186 : vector<1x1xf32> to vector<1x128xf32>
    %188 = arith.select %185, %187, %174 : vector<1x128xi1>, vector<1x128xf32>
    %c3_i32_72 = arith.constant 3 : i32
    %189 = arith.muli %146, %c3_i32_72 : i32
    %c1_i32_73 = arith.constant 1 : i32
    %190 = arith.addi %189, %c1_i32_73 : i32
    %191 = arith.index_cast %190 : i32 to index
    %192 = memref.load %arg2[%191] : memref<24xi32, #tpu.memory_space<smem>>
    %193 = arith.index_cast %192 : i32 to index
    %c0_74 = arith.constant 0 : index
    %194 = vector.load %arg4[%193, %c0_74] : memref<16x8xf32, #tpu.memory_space<vmem>>, vector<1x8xf32>
    %195 = arith.mulf %173, %194 : vector<1x8xf32>
    %cst_75 = arith.constant dense<0.000000e+00> : vector<1xf32>
    %196 = vector.multi_reduction <add>, %195, %cst_75 [1] : vector<1x8xf32> to vector<1xf32>
    %197 = vector.shape_cast %196 : vector<1xf32> to vector<1x1xf32>
    %c1_i32_76 = arith.constant 1 : i32
    %198 = vector.broadcast %c1_i32_76 : i32 to vector<1x128xi32>
    %199 = arith.cmpi eq, %0, %198 : vector<1x128xi32>
    %200 = vector.shape_cast %197 : vector<1x1xf32> to vector<1x1xf32>
    %201 = vector.broadcast %200 : vector<1x1xf32> to vector<1x128xf32>
    %202 = arith.select %199, %201, %188 : vector<1x128xi1>, vector<1x128xf32>
    %c3_i32_77 = arith.constant 3 : i32
    %203 = arith.muli %146, %c3_i32_77 : i32
    %c2_i32_78 = arith.constant 2 : i32
    %204 = arith.addi %203, %c2_i32_78 : i32
    %205 = arith.index_cast %204 : i32 to index
    %206 = memref.load %arg2[%205] : memref<24xi32, #tpu.memory_space<smem>>
    %207 = arith.index_cast %206 : i32 to index
    %c0_79 = arith.constant 0 : index
    %208 = vector.load %arg4[%207, %c0_79] : memref<16x8xf32, #tpu.memory_space<vmem>>, vector<1x8xf32>
    %209 = arith.mulf %173, %208 : vector<1x8xf32>
    %cst_80 = arith.constant dense<0.000000e+00> : vector<1xf32>
    %210 = vector.multi_reduction <add>, %209, %cst_80 [1] : vector<1x8xf32> to vector<1xf32>
    %211 = vector.shape_cast %210 : vector<1xf32> to vector<1x1xf32>
    %c2_i32_81 = arith.constant 2 : i32
    %212 = vector.broadcast %c2_i32_81 : i32 to vector<1x128xi32>
    %213 = arith.cmpi eq, %0, %212 : vector<1x128xi32>
    %214 = vector.shape_cast %211 : vector<1x1xf32> to vector<1x1xf32>
    %215 = vector.broadcast %214 : vector<1x1xf32> to vector<1x128xf32>
    %216 = arith.select %213, %215, %202 : vector<1x128xi1>, vector<1x128xf32>
    %c8_i32_82 = arith.constant 8 : i32
    %217 = arith.muli %arg0, %c8_i32_82 : i32
    %c3_i32_83 = arith.constant 3 : i32
    %218 = arith.addi %217, %c3_i32_83 : i32
    %c4_i32_84 = arith.constant 4 : i32
    %219 = arith.muli %218, %c4_i32_84 : i32
    %c0_i32_85 = arith.constant 0 : i32
    %220 = arith.addi %219, %c0_i32_85 : i32
    %221 = arith.index_cast %220 : i32 to index
    %222 = memref.load %arg1[%221] : memref<32xi32, #tpu.memory_space<smem>>
    %223 = arith.index_cast %222 : i32 to index
    %c0_86 = arith.constant 0 : index
    %224 = vector.load %arg3[%223, %c0_86] : memref<16x8xf32, #tpu.memory_space<vmem>>, vector<1x8xf32>
    %c4_i32_87 = arith.constant 4 : i32
    %225 = arith.muli %218, %c4_i32_87 : i32
    %c1_i32_88 = arith.constant 1 : i32
    %226 = arith.addi %225, %c1_i32_88 : i32
    %227 = arith.index_cast %226 : i32 to index
    %228 = memref.load %arg1[%227] : memref<32xi32, #tpu.memory_space<smem>>
    %229 = arith.index_cast %228 : i32 to index
    %c0_89 = arith.constant 0 : index
    %230 = vector.load %arg3[%229, %c0_89] : memref<16x8xf32, #tpu.memory_space<vmem>>, vector<1x8xf32>
    %231 = arith.addf %224, %230 : vector<1x8xf32>
    %c4_i32_90 = arith.constant 4 : i32
    %232 = arith.muli %218, %c4_i32_90 : i32
    %c2_i32_91 = arith.constant 2 : i32
    %233 = arith.addi %232, %c2_i32_91 : i32
    %234 = arith.index_cast %233 : i32 to index
    %235 = memref.load %arg1[%234] : memref<32xi32, #tpu.memory_space<smem>>
    %236 = arith.index_cast %235 : i32 to index
    %c0_92 = arith.constant 0 : index
    %237 = vector.load %arg3[%236, %c0_92] : memref<16x8xf32, #tpu.memory_space<vmem>>, vector<1x8xf32>
    %238 = arith.addf %231, %237 : vector<1x8xf32>
    %c4_i32_93 = arith.constant 4 : i32
    %239 = arith.muli %218, %c4_i32_93 : i32
    %c3_i32_94 = arith.constant 3 : i32
    %240 = arith.addi %239, %c3_i32_94 : i32
    %241 = arith.index_cast %240 : i32 to index
    %242 = memref.load %arg1[%241] : memref<32xi32, #tpu.memory_space<smem>>
    %243 = arith.index_cast %242 : i32 to index
    %c0_95 = arith.constant 0 : index
    %244 = vector.load %arg3[%243, %c0_95] : memref<16x8xf32, #tpu.memory_space<vmem>>, vector<1x8xf32>
    %245 = arith.addf %238, %244 : vector<1x8xf32>
    %cst_96 = arith.constant 0.000000e+00 : f32
    %246 = vector.broadcast %cst_96 : f32 to vector<1x128xf32>
    %c3_i32_97 = arith.constant 3 : i32
    %247 = arith.muli %218, %c3_i32_97 : i32
    %c0_i32_98 = arith.constant 0 : i32
    %248 = arith.addi %247, %c0_i32_98 : i32
    %249 = arith.index_cast %248 : i32 to index
    %250 = memref.load %arg2[%249] : memref<24xi32, #tpu.memory_space<smem>>
    %251 = arith.index_cast %250 : i32 to index
    %c0_99 = arith.constant 0 : index
    %252 = vector.load %arg4[%251, %c0_99] : memref<16x8xf32, #tpu.memory_space<vmem>>, vector<1x8xf32>
    %253 = arith.mulf %245, %252 : vector<1x8xf32>
    %cst_100 = arith.constant dense<0.000000e+00> : vector<1xf32>
    %254 = vector.multi_reduction <add>, %253, %cst_100 [1] : vector<1x8xf32> to vector<1xf32>
    %255 = vector.shape_cast %254 : vector<1xf32> to vector<1x1xf32>
    %c0_i32_101 = arith.constant 0 : i32
    %256 = vector.broadcast %c0_i32_101 : i32 to vector<1x128xi32>
    %257 = arith.cmpi eq, %0, %256 : vector<1x128xi32>
    %258 = vector.shape_cast %255 : vector<1x1xf32> to vector<1x1xf32>
    %259 = vector.broadcast %258 : vector<1x1xf32> to vector<1x128xf32>
    %260 = arith.select %257, %259, %246 : vector<1x128xi1>, vector<1x128xf32>
    %c3_i32_102 = arith.constant 3 : i32
    %261 = arith.muli %218, %c3_i32_102 : i32
    %c1_i32_103 = arith.constant 1 : i32
    %262 = arith.addi %261, %c1_i32_103 : i32
    %263 = arith.index_cast %262 : i32 to index
    %264 = memref.load %arg2[%263] : memref<24xi32, #tpu.memory_space<smem>>
    %265 = arith.index_cast %264 : i32 to index
    %c0_104 = arith.constant 0 : index
    %266 = vector.load %arg4[%265, %c0_104] : memref<16x8xf32, #tpu.memory_space<vmem>>, vector<1x8xf32>
    %267 = arith.mulf %245, %266 : vector<1x8xf32>
    %cst_105 = arith.constant dense<0.000000e+00> : vector<1xf32>
    %268 = vector.multi_reduction <add>, %267, %cst_105 [1] : vector<1x8xf32> to vector<1xf32>
    %269 = vector.shape_cast %268 : vector<1xf32> to vector<1x1xf32>
    %c1_i32_106 = arith.constant 1 : i32
    %270 = vector.broadcast %c1_i32_106 : i32 to vector<1x128xi32>
    %271 = arith.cmpi eq, %0, %270 : vector<1x128xi32>
    %272 = vector.shape_cast %269 : vector<1x1xf32> to vector<1x1xf32>
    %273 = vector.broadcast %272 : vector<1x1xf32> to vector<1x128xf32>
    %274 = arith.select %271, %273, %260 : vector<1x128xi1>, vector<1x128xf32>
    %c3_i32_107 = arith.constant 3 : i32
    %275 = arith.muli %218, %c3_i32_107 : i32
    %c2_i32_108 = arith.constant 2 : i32
    %276 = arith.addi %275, %c2_i32_108 : i32
    %277 = arith.index_cast %276 : i32 to index
    %278 = memref.load %arg2[%277] : memref<24xi32, #tpu.memory_space<smem>>
    %279 = arith.index_cast %278 : i32 to index
    %c0_109 = arith.constant 0 : index
    %280 = vector.load %arg4[%279, %c0_109] : memref<16x8xf32, #tpu.memory_space<vmem>>, vector<1x8xf32>
    %281 = arith.mulf %245, %280 : vector<1x8xf32>
    %cst_110 = arith.constant dense<0.000000e+00> : vector<1xf32>
    %282 = vector.multi_reduction <add>, %281, %cst_110 [1] : vector<1x8xf32> to vector<1xf32>
    %283 = vector.shape_cast %282 : vector<1xf32> to vector<1x1xf32>
    %c2_i32_111 = arith.constant 2 : i32
    %284 = vector.broadcast %c2_i32_111 : i32 to vector<1x128xi32>
    %285 = arith.cmpi eq, %0, %284 : vector<1x128xi32>
    %286 = vector.shape_cast %283 : vector<1x1xf32> to vector<1x1xf32>
    %287 = vector.broadcast %286 : vector<1x1xf32> to vector<1x128xf32>
    %288 = arith.select %285, %287, %274 : vector<1x128xi1>, vector<1x128xf32>
    %c8_i32_112 = arith.constant 8 : i32
    %289 = arith.muli %arg0, %c8_i32_112 : i32
    %c4_i32_113 = arith.constant 4 : i32
    %290 = arith.addi %289, %c4_i32_113 : i32
    %c4_i32_114 = arith.constant 4 : i32
    %291 = arith.muli %290, %c4_i32_114 : i32
    %c0_i32_115 = arith.constant 0 : i32
    %292 = arith.addi %291, %c0_i32_115 : i32
    %293 = arith.index_cast %292 : i32 to index
    %294 = memref.load %arg1[%293] : memref<32xi32, #tpu.memory_space<smem>>
    %295 = arith.index_cast %294 : i32 to index
    %c0_116 = arith.constant 0 : index
    %296 = vector.load %arg3[%295, %c0_116] : memref<16x8xf32, #tpu.memory_space<vmem>>, vector<1x8xf32>
    %c4_i32_117 = arith.constant 4 : i32
    %297 = arith.muli %290, %c4_i32_117 : i32
    %c1_i32_118 = arith.constant 1 : i32
    %298 = arith.addi %297, %c1_i32_118 : i32
    %299 = arith.index_cast %298 : i32 to index
    %300 = memref.load %arg1[%299] : memref<32xi32, #tpu.memory_space<smem>>
    %301 = arith.index_cast %300 : i32 to index
    %c0_119 = arith.constant 0 : index
    %302 = vector.load %arg3[%301, %c0_119] : memref<16x8xf32, #tpu.memory_space<vmem>>, vector<1x8xf32>
    %303 = arith.addf %296, %302 : vector<1x8xf32>
    %c4_i32_120 = arith.constant 4 : i32
    %304 = arith.muli %290, %c4_i32_120 : i32
    %c2_i32_121 = arith.constant 2 : i32
    %305 = arith.addi %304, %c2_i32_121 : i32
    %306 = arith.index_cast %305 : i32 to index
    %307 = memref.load %arg1[%306] : memref<32xi32, #tpu.memory_space<smem>>
    %308 = arith.index_cast %307 : i32 to index
    %c0_122 = arith.constant 0 : index
    %309 = vector.load %arg3[%308, %c0_122] : memref<16x8xf32, #tpu.memory_space<vmem>>, vector<1x8xf32>
    %310 = arith.addf %303, %309 : vector<1x8xf32>
    %c4_i32_123 = arith.constant 4 : i32
    %311 = arith.muli %290, %c4_i32_123 : i32
    %c3_i32_124 = arith.constant 3 : i32
    %312 = arith.addi %311, %c3_i32_124 : i32
    %313 = arith.index_cast %312 : i32 to index
    %314 = memref.load %arg1[%313] : memref<32xi32, #tpu.memory_space<smem>>
    %315 = arith.index_cast %314 : i32 to index
    %c0_125 = arith.constant 0 : index
    %316 = vector.load %arg3[%315, %c0_125] : memref<16x8xf32, #tpu.memory_space<vmem>>, vector<1x8xf32>
    %317 = arith.addf %310, %316 : vector<1x8xf32>
    %cst_126 = arith.constant 0.000000e+00 : f32
    %318 = vector.broadcast %cst_126 : f32 to vector<1x128xf32>
    %c3_i32_127 = arith.constant 3 : i32
    %319 = arith.muli %290, %c3_i32_127 : i32
    %c0_i32_128 = arith.constant 0 : i32
    %320 = arith.addi %319, %c0_i32_128 : i32
    %321 = arith.index_cast %320 : i32 to index
    %322 = memref.load %arg2[%321] : memref<24xi32, #tpu.memory_space<smem>>
    %323 = arith.index_cast %322 : i32 to index
    %c0_129 = arith.constant 0 : index
    %324 = vector.load %arg4[%323, %c0_129] : memref<16x8xf32, #tpu.memory_space<vmem>>, vector<1x8xf32>
    %325 = arith.mulf %317, %324 : vector<1x8xf32>
    %cst_130 = arith.constant dense<0.000000e+00> : vector<1xf32>
    %326 = vector.multi_reduction <add>, %325, %cst_130 [1] : vector<1x8xf32> to vector<1xf32>
    %327 = vector.shape_cast %326 : vector<1xf32> to vector<1x1xf32>
    %c0_i32_131 = arith.constant 0 : i32
    %328 = vector.broadcast %c0_i32_131 : i32 to vector<1x128xi32>
    %329 = arith.cmpi eq, %0, %328 : vector<1x128xi32>
    %330 = vector.shape_cast %327 : vector<1x1xf32> to vector<1x1xf32>
    %331 = vector.broadcast %330 : vector<1x1xf32> to vector<1x128xf32>
    %332 = arith.select %329, %331, %318 : vector<1x128xi1>, vector<1x128xf32>
    %c3_i32_132 = arith.constant 3 : i32
    %333 = arith.muli %290, %c3_i32_132 : i32
    %c1_i32_133 = arith.constant 1 : i32
    %334 = arith.addi %333, %c1_i32_133 : i32
    %335 = arith.index_cast %334 : i32 to index
    %336 = memref.load %arg2[%335] : memref<24xi32, #tpu.memory_space<smem>>
    %337 = arith.index_cast %336 : i32 to index
    %c0_134 = arith.constant 0 : index
    %338 = vector.load %arg4[%337, %c0_134] : memref<16x8xf32, #tpu.memory_space<vmem>>, vector<1x8xf32>
    %339 = arith.mulf %317, %338 : vector<1x8xf32>
    %cst_135 = arith.constant dense<0.000000e+00> : vector<1xf32>
    %340 = vector.multi_reduction <add>, %339, %cst_135 [1] : vector<1x8xf32> to vector<1xf32>
    %341 = vector.shape_cast %340 : vector<1xf32> to vector<1x1xf32>
    %c1_i32_136 = arith.constant 1 : i32
    %342 = vector.broadcast %c1_i32_136 : i32 to vector<1x128xi32>
    %343 = arith.cmpi eq, %0, %342 : vector<1x128xi32>
    %344 = vector.shape_cast %341 : vector<1x1xf32> to vector<1x1xf32>
    %345 = vector.broadcast %344 : vector<1x1xf32> to vector<1x128xf32>
    %346 = arith.select %343, %345, %332 : vector<1x128xi1>, vector<1x128xf32>
    %c3_i32_137 = arith.constant 3 : i32
    %347 = arith.muli %290, %c3_i32_137 : i32
    %c2_i32_138 = arith.constant 2 : i32
    %348 = arith.addi %347, %c2_i32_138 : i32
    %349 = arith.index_cast %348 : i32 to index
    %350 = memref.load %arg2[%349] : memref<24xi32, #tpu.memory_space<smem>>
    %351 = arith.index_cast %350 : i32 to index
    %c0_139 = arith.constant 0 : index
    %352 = vector.load %arg4[%351, %c0_139] : memref<16x8xf32, #tpu.memory_space<vmem>>, vector<1x8xf32>
    %353 = arith.mulf %317, %352 : vector<1x8xf32>
    %cst_140 = arith.constant dense<0.000000e+00> : vector<1xf32>
    %354 = vector.multi_reduction <add>, %353, %cst_140 [1] : vector<1x8xf32> to vector<1xf32>
    %355 = vector.shape_cast %354 : vector<1xf32> to vector<1x1xf32>
    %c2_i32_141 = arith.constant 2 : i32
    %356 = vector.broadcast %c2_i32_141 : i32 to vector<1x128xi32>
    %357 = arith.cmpi eq, %0, %356 : vector<1x128xi32>
    %358 = vector.shape_cast %355 : vector<1x1xf32> to vector<1x1xf32>
    %359 = vector.broadcast %358 : vector<1x1xf32> to vector<1x128xf32>
    %360 = arith.select %357, %359, %346 : vector<1x128xi1>, vector<1x128xf32>
    %c8_i32_142 = arith.constant 8 : i32
    %361 = arith.muli %arg0, %c8_i32_142 : i32
    %c5_i32 = arith.constant 5 : i32
    %362 = arith.addi %361, %c5_i32 : i32
    %c4_i32_143 = arith.constant 4 : i32
    %363 = arith.muli %362, %c4_i32_143 : i32
    %c0_i32_144 = arith.constant 0 : i32
    %364 = arith.addi %363, %c0_i32_144 : i32
    %365 = arith.index_cast %364 : i32 to index
    %366 = memref.load %arg1[%365] : memref<32xi32, #tpu.memory_space<smem>>
    %367 = arith.index_cast %366 : i32 to index
    %c0_145 = arith.constant 0 : index
    %368 = vector.load %arg3[%367, %c0_145] : memref<16x8xf32, #tpu.memory_space<vmem>>, vector<1x8xf32>
    %c4_i32_146 = arith.constant 4 : i32
    %369 = arith.muli %362, %c4_i32_146 : i32
    %c1_i32_147 = arith.constant 1 : i32
    %370 = arith.addi %369, %c1_i32_147 : i32
    %371 = arith.index_cast %370 : i32 to index
    %372 = memref.load %arg1[%371] : memref<32xi32, #tpu.memory_space<smem>>
    %373 = arith.index_cast %372 : i32 to index
    %c0_148 = arith.constant 0 : index
    %374 = vector.load %arg3[%373, %c0_148] : memref<16x8xf32, #tpu.memory_space<vmem>>, vector<1x8xf32>
    %375 = arith.addf %368, %374 : vector<1x8xf32>
    %c4_i32_149 = arith.constant 4 : i32
    %376 = arith.muli %362, %c4_i32_149 : i32
    %c2_i32_150 = arith.constant 2 : i32
    %377 = arith.addi %376, %c2_i32_150 : i32
    %378 = arith.index_cast %377 : i32 to index
    %379 = memref.load %arg1[%378] : memref<32xi32, #tpu.memory_space<smem>>
    %380 = arith.index_cast %379 : i32 to index
    %c0_151 = arith.constant 0 : index
    %381 = vector.load %arg3[%380, %c0_151] : memref<16x8xf32, #tpu.memory_space<vmem>>, vector<1x8xf32>
    %382 = arith.addf %375, %381 : vector<1x8xf32>
    %c4_i32_152 = arith.constant 4 : i32
    %383 = arith.muli %362, %c4_i32_152 : i32
    %c3_i32_153 = arith.constant 3 : i32
    %384 = arith.addi %383, %c3_i32_153 : i32
    %385 = arith.index_cast %384 : i32 to index
    %386 = memref.load %arg1[%385] : memref<32xi32, #tpu.memory_space<smem>>
    %387 = arith.index_cast %386 : i32 to index
    %c0_154 = arith.constant 0 : index
    %388 = vector.load %arg3[%387, %c0_154] : memref<16x8xf32, #tpu.memory_space<vmem>>, vector<1x8xf32>
    %389 = arith.addf %382, %388 : vector<1x8xf32>
    %cst_155 = arith.constant 0.000000e+00 : f32
    %390 = vector.broadcast %cst_155 : f32 to vector<1x128xf32>
    %c3_i32_156 = arith.constant 3 : i32
    %391 = arith.muli %362, %c3_i32_156 : i32
    %c0_i32_157 = arith.constant 0 : i32
    %392 = arith.addi %391, %c0_i32_157 : i32
    %393 = arith.index_cast %392 : i32 to index
    %394 = memref.load %arg2[%393] : memref<24xi32, #tpu.memory_space<smem>>
    %395 = arith.index_cast %394 : i32 to index
    %c0_158 = arith.constant 0 : index
    %396 = vector.load %arg4[%395, %c0_158] : memref<16x8xf32, #tpu.memory_space<vmem>>, vector<1x8xf32>
    %397 = arith.mulf %389, %396 : vector<1x8xf32>
    %cst_159 = arith.constant dense<0.000000e+00> : vector<1xf32>
    %398 = vector.multi_reduction <add>, %397, %cst_159 [1] : vector<1x8xf32> to vector<1xf32>
    %399 = vector.shape_cast %398 : vector<1xf32> to vector<1x1xf32>
    %c0_i32_160 = arith.constant 0 : i32
    %400 = vector.broadcast %c0_i32_160 : i32 to vector<1x128xi32>
    %401 = arith.cmpi eq, %0, %400 : vector<1x128xi32>
    %402 = vector.shape_cast %399 : vector<1x1xf32> to vector<1x1xf32>
    %403 = vector.broadcast %402 : vector<1x1xf32> to vector<1x128xf32>
    %404 = arith.select %401, %403, %390 : vector<1x128xi1>, vector<1x128xf32>
    %c3_i32_161 = arith.constant 3 : i32
    %405 = arith.muli %362, %c3_i32_161 : i32
    %c1_i32_162 = arith.constant 1 : i32
    %406 = arith.addi %405, %c1_i32_162 : i32
    %407 = arith.index_cast %406 : i32 to index
    %408 = memref.load %arg2[%407] : memref<24xi32, #tpu.memory_space<smem>>
    %409 = arith.index_cast %408 : i32 to index
    %c0_163 = arith.constant 0 : index
    %410 = vector.load %arg4[%409, %c0_163] : memref<16x8xf32, #tpu.memory_space<vmem>>, vector<1x8xf32>
    %411 = arith.mulf %389, %410 : vector<1x8xf32>
    %cst_164 = arith.constant dense<0.000000e+00> : vector<1xf32>
    %412 = vector.multi_reduction <add>, %411, %cst_164 [1] : vector<1x8xf32> to vector<1xf32>
    %413 = vector.shape_cast %412 : vector<1xf32> to vector<1x1xf32>
    %c1_i32_165 = arith.constant 1 : i32
    %414 = vector.broadcast %c1_i32_165 : i32 to vector<1x128xi32>
    %415 = arith.cmpi eq, %0, %414 : vector<1x128xi32>
    %416 = vector.shape_cast %413 : vector<1x1xf32> to vector<1x1xf32>
    %417 = vector.broadcast %416 : vector<1x1xf32> to vector<1x128xf32>
    %418 = arith.select %415, %417, %404 : vector<1x128xi1>, vector<1x128xf32>
    %c3_i32_166 = arith.constant 3 : i32
    %419 = arith.muli %362, %c3_i32_166 : i32
    %c2_i32_167 = arith.constant 2 : i32
    %420 = arith.addi %419, %c2_i32_167 : i32
    %421 = arith.index_cast %420 : i32 to index
    %422 = memref.load %arg2[%421] : memref<24xi32, #tpu.memory_space<smem>>
    %423 = arith.index_cast %422 : i32 to index
    %c0_168 = arith.constant 0 : index
    %424 = vector.load %arg4[%423, %c0_168] : memref<16x8xf32, #tpu.memory_space<vmem>>, vector<1x8xf32>
    %425 = arith.mulf %389, %424 : vector<1x8xf32>
    %cst_169 = arith.constant dense<0.000000e+00> : vector<1xf32>
    %426 = vector.multi_reduction <add>, %425, %cst_169 [1] : vector<1x8xf32> to vector<1xf32>
    %427 = vector.shape_cast %426 : vector<1xf32> to vector<1x1xf32>
    %c2_i32_170 = arith.constant 2 : i32
    %428 = vector.broadcast %c2_i32_170 : i32 to vector<1x128xi32>
    %429 = arith.cmpi eq, %0, %428 : vector<1x128xi32>
    %430 = vector.shape_cast %427 : vector<1x1xf32> to vector<1x1xf32>
    %431 = vector.broadcast %430 : vector<1x1xf32> to vector<1x128xf32>
    %432 = arith.select %429, %431, %418 : vector<1x128xi1>, vector<1x128xf32>
    %c8_i32_171 = arith.constant 8 : i32
    %433 = arith.muli %arg0, %c8_i32_171 : i32
    %c6_i32 = arith.constant 6 : i32
    %434 = arith.addi %433, %c6_i32 : i32
    %c4_i32_172 = arith.constant 4 : i32
    %435 = arith.muli %434, %c4_i32_172 : i32
    %c0_i32_173 = arith.constant 0 : i32
    %436 = arith.addi %435, %c0_i32_173 : i32
    %437 = arith.index_cast %436 : i32 to index
    %438 = memref.load %arg1[%437] : memref<32xi32, #tpu.memory_space<smem>>
    %439 = arith.index_cast %438 : i32 to index
    %c0_174 = arith.constant 0 : index
    %440 = vector.load %arg3[%439, %c0_174] : memref<16x8xf32, #tpu.memory_space<vmem>>, vector<1x8xf32>
    %c4_i32_175 = arith.constant 4 : i32
    %441 = arith.muli %434, %c4_i32_175 : i32
    %c1_i32_176 = arith.constant 1 : i32
    %442 = arith.addi %441, %c1_i32_176 : i32
    %443 = arith.index_cast %442 : i32 to index
    %444 = memref.load %arg1[%443] : memref<32xi32, #tpu.memory_space<smem>>
    %445 = arith.index_cast %444 : i32 to index
    %c0_177 = arith.constant 0 : index
    %446 = vector.load %arg3[%445, %c0_177] : memref<16x8xf32, #tpu.memory_space<vmem>>, vector<1x8xf32>
    %447 = arith.addf %440, %446 : vector<1x8xf32>
    %c4_i32_178 = arith.constant 4 : i32
    %448 = arith.muli %434, %c4_i32_178 : i32
    %c2_i32_179 = arith.constant 2 : i32
    %449 = arith.addi %448, %c2_i32_179 : i32
    %450 = arith.index_cast %449 : i32 to index
    %451 = memref.load %arg1[%450] : memref<32xi32, #tpu.memory_space<smem>>
    %452 = arith.index_cast %451 : i32 to index
    %c0_180 = arith.constant 0 : index
    %453 = vector.load %arg3[%452, %c0_180] : memref<16x8xf32, #tpu.memory_space<vmem>>, vector<1x8xf32>
    %454 = arith.addf %447, %453 : vector<1x8xf32>
    %c4_i32_181 = arith.constant 4 : i32
    %455 = arith.muli %434, %c4_i32_181 : i32
    %c3_i32_182 = arith.constant 3 : i32
    %456 = arith.addi %455, %c3_i32_182 : i32
    %457 = arith.index_cast %456 : i32 to index
    %458 = memref.load %arg1[%457] : memref<32xi32, #tpu.memory_space<smem>>
    %459 = arith.index_cast %458 : i32 to index
    %c0_183 = arith.constant 0 : index
    %460 = vector.load %arg3[%459, %c0_183] : memref<16x8xf32, #tpu.memory_space<vmem>>, vector<1x8xf32>
    %461 = arith.addf %454, %460 : vector<1x8xf32>
    %cst_184 = arith.constant 0.000000e+00 : f32
    %462 = vector.broadcast %cst_184 : f32 to vector<1x128xf32>
    %c3_i32_185 = arith.constant 3 : i32
    %463 = arith.muli %434, %c3_i32_185 : i32
    %c0_i32_186 = arith.constant 0 : i32
    %464 = arith.addi %463, %c0_i32_186 : i32
    %465 = arith.index_cast %464 : i32 to index
    %466 = memref.load %arg2[%465] : memref<24xi32, #tpu.memory_space<smem>>
    %467 = arith.index_cast %466 : i32 to index
    %c0_187 = arith.constant 0 : index
    %468 = vector.load %arg4[%467, %c0_187] : memref<16x8xf32, #tpu.memory_space<vmem>>, vector<1x8xf32>
    %469 = arith.mulf %461, %468 : vector<1x8xf32>
    %cst_188 = arith.constant dense<0.000000e+00> : vector<1xf32>
    %470 = vector.multi_reduction <add>, %469, %cst_188 [1] : vector<1x8xf32> to vector<1xf32>
    %471 = vector.shape_cast %470 : vector<1xf32> to vector<1x1xf32>
    %c0_i32_189 = arith.constant 0 : i32
    %472 = vector.broadcast %c0_i32_189 : i32 to vector<1x128xi32>
    %473 = arith.cmpi eq, %0, %472 : vector<1x128xi32>
    %474 = vector.shape_cast %471 : vector<1x1xf32> to vector<1x1xf32>
    %475 = vector.broadcast %474 : vector<1x1xf32> to vector<1x128xf32>
    %476 = arith.select %473, %475, %462 : vector<1x128xi1>, vector<1x128xf32>
    %c3_i32_190 = arith.constant 3 : i32
    %477 = arith.muli %434, %c3_i32_190 : i32
    %c1_i32_191 = arith.constant 1 : i32
    %478 = arith.addi %477, %c1_i32_191 : i32
    %479 = arith.index_cast %478 : i32 to index
    %480 = memref.load %arg2[%479] : memref<24xi32, #tpu.memory_space<smem>>
    %481 = arith.index_cast %480 : i32 to index
    %c0_192 = arith.constant 0 : index
    %482 = vector.load %arg4[%481, %c0_192] : memref<16x8xf32, #tpu.memory_space<vmem>>, vector<1x8xf32>
    %483 = arith.mulf %461, %482 : vector<1x8xf32>
    %cst_193 = arith.constant dense<0.000000e+00> : vector<1xf32>
    %484 = vector.multi_reduction <add>, %483, %cst_193 [1] : vector<1x8xf32> to vector<1xf32>
    %485 = vector.shape_cast %484 : vector<1xf32> to vector<1x1xf32>
    %c1_i32_194 = arith.constant 1 : i32
    %486 = vector.broadcast %c1_i32_194 : i32 to vector<1x128xi32>
    %487 = arith.cmpi eq, %0, %486 : vector<1x128xi32>
    %488 = vector.shape_cast %485 : vector<1x1xf32> to vector<1x1xf32>
    %489 = vector.broadcast %488 : vector<1x1xf32> to vector<1x128xf32>
    %490 = arith.select %487, %489, %476 : vector<1x128xi1>, vector<1x128xf32>
    %c3_i32_195 = arith.constant 3 : i32
    %491 = arith.muli %434, %c3_i32_195 : i32
    %c2_i32_196 = arith.constant 2 : i32
    %492 = arith.addi %491, %c2_i32_196 : i32
    %493 = arith.index_cast %492 : i32 to index
    %494 = memref.load %arg2[%493] : memref<24xi32, #tpu.memory_space<smem>>
    %495 = arith.index_cast %494 : i32 to index
    %c0_197 = arith.constant 0 : index
    %496 = vector.load %arg4[%495, %c0_197] : memref<16x8xf32, #tpu.memory_space<vmem>>, vector<1x8xf32>
    %497 = arith.mulf %461, %496 : vector<1x8xf32>
    %cst_198 = arith.constant dense<0.000000e+00> : vector<1xf32>
    %498 = vector.multi_reduction <add>, %497, %cst_198 [1] : vector<1x8xf32> to vector<1xf32>
    %499 = vector.shape_cast %498 : vector<1xf32> to vector<1x1xf32>
    %c2_i32_199 = arith.constant 2 : i32
    %500 = vector.broadcast %c2_i32_199 : i32 to vector<1x128xi32>
    %501 = arith.cmpi eq, %0, %500 : vector<1x128xi32>
    %502 = vector.shape_cast %499 : vector<1x1xf32> to vector<1x1xf32>
    %503 = vector.broadcast %502 : vector<1x1xf32> to vector<1x128xf32>
    %504 = arith.select %501, %503, %490 : vector<1x128xi1>, vector<1x128xf32>
    %c8_i32_200 = arith.constant 8 : i32
    %505 = arith.muli %arg0, %c8_i32_200 : i32
    %c7_i32 = arith.constant 7 : i32
    %506 = arith.addi %505, %c7_i32 : i32
    %c4_i32_201 = arith.constant 4 : i32
    %507 = arith.muli %506, %c4_i32_201 : i32
    %c0_i32_202 = arith.constant 0 : i32
    %508 = arith.addi %507, %c0_i32_202 : i32
    %509 = arith.index_cast %508 : i32 to index
    %510 = memref.load %arg1[%509] : memref<32xi32, #tpu.memory_space<smem>>
    %511 = arith.index_cast %510 : i32 to index
    %c0_203 = arith.constant 0 : index
    %512 = vector.load %arg3[%511, %c0_203] : memref<16x8xf32, #tpu.memory_space<vmem>>, vector<1x8xf32>
    %c4_i32_204 = arith.constant 4 : i32
    %513 = arith.muli %506, %c4_i32_204 : i32
    %c1_i32_205 = arith.constant 1 : i32
    %514 = arith.addi %513, %c1_i32_205 : i32
    %515 = arith.index_cast %514 : i32 to index
    %516 = memref.load %arg1[%515] : memref<32xi32, #tpu.memory_space<smem>>
    %517 = arith.index_cast %516 : i32 to index
    %c0_206 = arith.constant 0 : index
    %518 = vector.load %arg3[%517, %c0_206] : memref<16x8xf32, #tpu.memory_space<vmem>>, vector<1x8xf32>
    %519 = arith.addf %512, %518 : vector<1x8xf32>
    %c4_i32_207 = arith.constant 4 : i32
    %520 = arith.muli %506, %c4_i32_207 : i32
    %c2_i32_208 = arith.constant 2 : i32
    %521 = arith.addi %520, %c2_i32_208 : i32
    %522 = arith.index_cast %521 : i32 to index
    %523 = memref.load %arg1[%522] : memref<32xi32, #tpu.memory_space<smem>>
    %524 = arith.index_cast %523 : i32 to index
    %c0_209 = arith.constant 0 : index
    %525 = vector.load %arg3[%524, %c0_209] : memref<16x8xf32, #tpu.memory_space<vmem>>, vector<1x8xf32>
    %526 = arith.addf %519, %525 : vector<1x8xf32>
    %c4_i32_210 = arith.constant 4 : i32
    %527 = arith.muli %506, %c4_i32_210 : i32
    %c3_i32_211 = arith.constant 3 : i32
    %528 = arith.addi %527, %c3_i32_211 : i32
    %529 = arith.index_cast %528 : i32 to index
    %530 = memref.load %arg1[%529] : memref<32xi32, #tpu.memory_space<smem>>
    %531 = arith.index_cast %530 : i32 to index
    %c0_212 = arith.constant 0 : index
    %532 = vector.load %arg3[%531, %c0_212] : memref<16x8xf32, #tpu.memory_space<vmem>>, vector<1x8xf32>
    %533 = arith.addf %526, %532 : vector<1x8xf32>
    %cst_213 = arith.constant 0.000000e+00 : f32
    %534 = vector.broadcast %cst_213 : f32 to vector<1x128xf32>
    %c3_i32_214 = arith.constant 3 : i32
    %535 = arith.muli %506, %c3_i32_214 : i32
    %c0_i32_215 = arith.constant 0 : i32
    %536 = arith.addi %535, %c0_i32_215 : i32
    %537 = arith.index_cast %536 : i32 to index
    %538 = memref.load %arg2[%537] : memref<24xi32, #tpu.memory_space<smem>>
    %539 = arith.index_cast %538 : i32 to index
    %c0_216 = arith.constant 0 : index
    %540 = vector.load %arg4[%539, %c0_216] : memref<16x8xf32, #tpu.memory_space<vmem>>, vector<1x8xf32>
    %541 = arith.mulf %533, %540 : vector<1x8xf32>
    %cst_217 = arith.constant dense<0.000000e+00> : vector<1xf32>
    %542 = vector.multi_reduction <add>, %541, %cst_217 [1] : vector<1x8xf32> to vector<1xf32>
    %543 = vector.shape_cast %542 : vector<1xf32> to vector<1x1xf32>
    %c0_i32_218 = arith.constant 0 : i32
    %544 = vector.broadcast %c0_i32_218 : i32 to vector<1x128xi32>
    %545 = arith.cmpi eq, %0, %544 : vector<1x128xi32>
    %546 = vector.shape_cast %543 : vector<1x1xf32> to vector<1x1xf32>
    %547 = vector.broadcast %546 : vector<1x1xf32> to vector<1x128xf32>
    %548 = arith.select %545, %547, %534 : vector<1x128xi1>, vector<1x128xf32>
    %c3_i32_219 = arith.constant 3 : i32
    %549 = arith.muli %506, %c3_i32_219 : i32
    %c1_i32_220 = arith.constant 1 : i32
    %550 = arith.addi %549, %c1_i32_220 : i32
    %551 = arith.index_cast %550 : i32 to index
    %552 = memref.load %arg2[%551] : memref<24xi32, #tpu.memory_space<smem>>
    %553 = arith.index_cast %552 : i32 to index
    %c0_221 = arith.constant 0 : index
    %554 = vector.load %arg4[%553, %c0_221] : memref<16x8xf32, #tpu.memory_space<vmem>>, vector<1x8xf32>
    %555 = arith.mulf %533, %554 : vector<1x8xf32>
    %cst_222 = arith.constant dense<0.000000e+00> : vector<1xf32>
    %556 = vector.multi_reduction <add>, %555, %cst_222 [1] : vector<1x8xf32> to vector<1xf32>
    %557 = vector.shape_cast %556 : vector<1xf32> to vector<1x1xf32>
    %c1_i32_223 = arith.constant 1 : i32
    %558 = vector.broadcast %c1_i32_223 : i32 to vector<1x128xi32>
    %559 = arith.cmpi eq, %0, %558 : vector<1x128xi32>
    %560 = vector.shape_cast %557 : vector<1x1xf32> to vector<1x1xf32>
    %561 = vector.broadcast %560 : vector<1x1xf32> to vector<1x128xf32>
    %562 = arith.select %559, %561, %548 : vector<1x128xi1>, vector<1x128xf32>
    %c3_i32_224 = arith.constant 3 : i32
    %563 = arith.muli %506, %c3_i32_224 : i32
    %c2_i32_225 = arith.constant 2 : i32
    %564 = arith.addi %563, %c2_i32_225 : i32
    %565 = arith.index_cast %564 : i32 to index
    %566 = memref.load %arg2[%565] : memref<24xi32, #tpu.memory_space<smem>>
    %567 = arith.index_cast %566 : i32 to index
    %c0_226 = arith.constant 0 : index
    %568 = vector.load %arg4[%567, %c0_226] : memref<16x8xf32, #tpu.memory_space<vmem>>, vector<1x8xf32>
    %569 = arith.mulf %533, %568 : vector<1x8xf32>
    %cst_227 = arith.constant dense<0.000000e+00> : vector<1xf32>
    %570 = vector.multi_reduction <add>, %569, %cst_227 [1] : vector<1x8xf32> to vector<1xf32>
    %571 = vector.shape_cast %570 : vector<1xf32> to vector<1x1xf32>
    %c2_i32_228 = arith.constant 2 : i32
    %572 = vector.broadcast %c2_i32_228 : i32 to vector<1x128xi32>
    %573 = arith.cmpi eq, %0, %572 : vector<1x128xi32>
    %574 = vector.shape_cast %571 : vector<1x1xf32> to vector<1x1xf32>
    %575 = vector.broadcast %574 : vector<1x1xf32> to vector<1x128xf32>
    %576 = arith.select %573, %575, %562 : vector<1x128xi1>, vector<1x128xf32>
    %577 = tpu.concatenate %72, %144, %216, %288, %360, %432, %504, %576 in 0 : vector<1x128xf32>, vector<1x128xf32>, vector<1x128xf32>, vector<1x128xf32>, vector<1x128xf32>, vector<1x128xf32>, vector<1x128xf32>, vector<1x128xf32> -> vector<8x128xf32>
    %c0_229 = arith.constant 0 : index
    %c0_230 = arith.constant 0 : index
    %578 = vector.load %arg5[%c0_229, %c0_230] : memref<8x128xf32, #tpu.memory_space<vmem>>, vector<8x128xf32>
    tpu.vector_store %arg5[%c0_229, %c0_230], %577 {strides = array<i32>} : memref<8x128xf32, #tpu.memory_space<vmem>>, vector<8x128xf32>,
    return
  }
  func.func @transform_0(%arg0: i32, %arg1: memref<32xi32, #tpu.memory_space<smem>>, %arg2: memref<24xi32, #tpu.memory_space<smem>>) -> (i32, i32) {
    %c0_i32 = arith.constant 0 : i32
    %c0_i32_0 = arith.constant 0 : i32
    %c0_i32_1 = arith.constant 0 : i32
    return %c0_i32, %c0_i32_0 : i32, i32
  }
  func.func @transform_1(%arg0: i32, %arg1: memref<32xi32, #tpu.memory_space<smem>>, %arg2: memref<24xi32, #tpu.memory_space<smem>>) -> (i32, i32) {
    %c0_i32 = arith.constant 0 : i32
    %c0_i32_0 = arith.constant 0 : i32
    %c0_i32_1 = arith.constant 0 : i32
    return %c0_i32, %c0_i32_0 : i32, i32
  }
  func.func @transform_2(%arg0: i32, %arg1: memref<32xi32, #tpu.memory_space<smem>>, %arg2: memref<24xi32, #tpu.memory_space<smem>>) -> (i32, i32) {
    %c0_i32 = arith.constant 0 : i32
    %c0_i32_0 = arith.constant 0 : i32
    return %arg0, %c0_i32 : i32, i32
  }
}

</mosaic_0001>

<bundles_post_ra>
// kernel: tpu_custom_call.1
= control target key start
LH: loop header
LB: loop body
LE: loop exit
PB: predicated region body
PF: predicated region fallthrough
CT: control target
= control target key end

     0   :  { %s995_s0 = inlined_call_operand.vmem [shape: s32[32], index: 0, kind: input, shape index: {}]   ;;  %s996_s2 = inlined_call_operand.vmem [shape: f32[16,8], index: 2, kind: input, shape index: {}]   ;;  %s997_s3 = inlined_call_operand.vmem [shape: f32[16,8], index: 3, kind: input, shape index: {}]   ;;  %s998_s4 = inlined_call_operand.hbm [shape: f32[8,128], index: 4, kind: output, shape index: {}]   ;;  %s999_s1 = inlined_call_operand.vmem [shape: s32[24], index: 1, kind: input, shape index: {}]  }
   0x1   :  { %s9_s17 = sshll.u32 %s995_s0, 4  ;;  %s13_s20 = sshll.u32 %s999_s1, 4  ;;  %s10_s17 = int_to_ptr.vmem [resolvable:$true] %s9_s17  ;;  %s14_s20 = int_to_ptr.vmem [resolvable:$true] %s13_s20 }
   0x2   :  { %s569_s21 = scalar_lea.vmem %s10_s17, 16  ;;  %p574_p1 = scmp.lt.s32.totalorder %s10_s17, %s10_s17 }
   0x3   :  { %p570_p0 = scmp.ne.s32.totalorder %s10_s17, %s569_s21  ;;  %p575_p2 = scmp.lt.s32.totalorder %s569_s21, %s569_s21 }
   0x5   :  { %p576_p3 = por %p575_p2, %p574_p1 }
   0x7   :  { %p577_p4 = pnand %p576_p3, %p570_p0 }
   0x9   :  { %580 = shalt.err (!%p577_p4)  }
   0xa   :  { %s617_s22 = smov [#allocation3]   ;;  %s581_s23 = scalar_lea.vmem %s14_s20, 16 }
   0xb   :  { %12 = dma.vmem_to_smem %s10_s17, 16, %s617_s22, [#allocation2] }
   0xc   :  { %p582_p5 = scmp.ne.s32.totalorder %s14_s20, %s581_s23  ;;  %p586_p6 = scmp.lt.s32.totalorder %s14_s20, %s14_s20 }
   0xd   :  { %p587_p7 = scmp.lt.s32.totalorder %s581_s23, %s581_s23 }
   0xf   :  { %p588_p8 = por %p587_p7, %p586_p6 }
  0x11   :  { %p589_p9 = pnand %p588_p8, %p582_p5 }
  0x13   :  { %592 = shalt.err (!%p589_p9)  }
  0x14   :  { %s618_s0 = smov [#allocation4]  }
  0x15   :  { %16 = dma.vmem_to_smem %s14_s20, 16, %s618_s0, [#allocation2] }
  0x16   :  { %613 = dma.done.wait [#allocation2], 32 }
  0x17   :  { %614 = vsyncadd [#allocation2], 4294967264 }
  0x18   :  { %18 = sfence }
  0x19   :  { %s524_s1 = sld [smem:[#allocation3 + $0x8]] }
  0x1a   :  { %19 = vsyncpa [#allocation6], 0  ;;  %s525_s24 = sld [smem:[#allocation3 + $0x9]]  ;;  %vm50_vm0 = vcmask 57344   ;;  %vm427_vm4 = vcmask 1040384   ;;  %vm429_vm5 = vcmask 1041408  }
  0x1b   :  { %s526_s25 = sld [smem:[#allocation3 + $0xa]]  ;;  %vm431_vm6 = vcmask 1042432   ;;  %vm433_vm7 = vcmask 1043456   ;;  %vm435_vm8 = vcmask 1044480   ;;  %vm437_vm9 = vcmask 1045504  }
  0x1c   :  { %s527_s26 = sld [smem:[#allocation3 + $0xb]]  ;;  %vm439_vm10 = vcmask 1046528  }
  0x1d   :  { %s528_s27 = sld [smem:[#allocation4 + $0x6]] }
  0x1e   :  { %s517_s28 = sld [smem:[#allocation3 + $0x4]] }
  0x1f   :  { %s127_s5 = scalar_lea.vmem %s996_s2, %s524_s1  ;;  %s518_s6 = sld [smem:[#allocation3 + $0x5]] }
  0x20   :  { %v128_v0 = vld [vmem:[%s127_s5] sm:$0x1]  ;;  %s131_s9 = scalar_lea.vmem %s996_s2, %s525_s24  ;;  %s519_s10 = sld [smem:[#allocation3 + $0x6]] }
  0x21   :  { %v132_v1 = vld [vmem:[%s131_s9] sm:$0x1]  ;;  %s136_s13 = scalar_lea.vmem %s996_s2, %s526_s25  ;;  %s520_s14 = sld [smem:[#allocation3 + $0x7]] }
  0x22   :  { %v133_v2 = vadd.f32 %v132_v1, %v128_v0  ;;  %v137_v3 = vld [vmem:[%s136_s13] sm:$0x1]  ;;  %s141_s17 = scalar_lea.vmem %s996_s2, %s527_s26  ;;  %s521_s18 = sld [smem:[#allocation4 + $0x3]] }
  0x23   :  { %v142_v4 = vld [vmem:[%s141_s17] sm:$0x1]  ;;  %s146_s21 = scalar_lea.vmem %s997_s3, %s528_s27  ;;  %s522_s22 = sld [smem:[#allocation4 + $0x4]] }
  0x24   :  { %v138_v5 = vadd.f32 %v137_v3, %v133_v2  ;;  %s80_s1 = scalar_lea.vmem %s996_s2, %s517_s28  ;;  %s27_s24 = sld [smem:[#allocation3]]  ;;  %v147_v6 = vld [vmem:[%s146_s21] sm:$0x1] }
  0x25   :  { %v81_v7 = vld [vmem:[%s80_s1] sm:$0x1]  ;;  %s84_s30 = scalar_lea.vmem %s996_s2, %s518_s6  ;;  %s512_s26 = sld [smem:[#allocation3 + $0x1]] }
  0x26   :  { %v672_v8 = vadd.f32 %v142_v4, %v138_v5  ;;  %v85_v9 = vld [vmem:[%s84_s30] sm:$0x1]  ;;  %s89_s27 = scalar_lea.vmem %s996_s2, %s519_s10  ;;  %s677_s8 = sld [smem:[#allocation3 + $0x2]] }
  0x27   :  { %v86_v10 = vadd.f32 %v85_v9, %v81_v7  ;;  %v90_v11 = vld [vmem:[%s89_s27] sm:$0x1]  ;;  %s94_s11 = scalar_lea.vmem %s996_s2, %s520_s14  ;;  %s514_s12 = sld [smem:[#allocation3 + $0x3]] }
  0x28   :  { %v148_v12 = vmul.f32 %v147_v6, %v672_v8  ;;  %v95_v13 = vld [vmem:[%s94_s11] sm:$0x1]  ;;  %s99_s15 = scalar_lea.vmem %s997_s3, %s521_s18  ;;  %s686_s16 = sld [smem:[#allocation4]] }
  0x29   :  { %v91_v14 = vadd.f32 %v90_v11, %v86_v10  ;;  %v100_v15 = vld [vmem:[%s99_s15] sm:$0x1]  ;;  %s108_s19 = scalar_lea.vmem %s997_s3, %s522_s22  ;;  %s523_s20 = sld [smem:[#allocation4 + $0x5]] }
  0x2a   :  { %v149_v16 = vsel %vm50_vm0, %v148_v12, 0.0  ;;  %v109_v17 = vld [vmem:[%s108_s19] sm:$0x1]  ;;  %s28_s23 = scalar_lea.vmem %s996_s2, %s27_s24  ;;  %s695_s0 = sld [smem:[#allocation4 + $0x7]] }
  0x2b   :  { %150 = vadd.xlane.f32.xlu1 %v149_v16  ;;  %v96_v18 = vadd.f32 %v95_v13, %v91_v14  ;;  %v29_v19 = vld [vmem:[%s28_s23] sm:$0x1]  ;;  %s32_s25 = scalar_lea.vmem %s996_s2, %s512_s26  ;;  %s700_s29 = sld [smem:[#allocation3 + $0xc]] }
  0x2c   :  { %v33_v20 = vld [vmem:[%s32_s25] sm:$0x1]  ;;  %s37_s5 = scalar_lea.vmem %s996_s2, %s677_s8  ;;  %s706_s7 = sld [smem:[#allocation3 + $0xd]] }
  0x2d   :  { %v101_v21 = vmul.f32 %v100_v15, %v96_v18  ;;  %v110_v22 = vmul.f32 %v109_v17, %v96_v18  ;;  %v34_v23 = vadd.f32 %v33_v20, %v29_v19  ;;  %v38_v24 = vld [vmem:[%s37_s5] sm:$0x1]  ;;  %s42_s28 = scalar_lea.vmem %s996_s2, %s514_s12  ;;  %s711_s9 = sld [smem:[#allocation3 + $0xe]] }
  0x2e   :  { %v43_v25 = vld [vmem:[%s42_s28] sm:$0x1]  ;;  %s47_s6 = scalar_lea.vmem %s997_s3, %s686_s16  ;;  %s717_s8 = sld [smem:[#allocation3 + $0xf]] }
  0x2f   :  { %v102_v26 = vsel %vm50_vm0, %v101_v21, 0.0  ;;  %v39_v27 = vadd.f32 %v38_v24, %v34_v23  ;;  %s117_s10 = scalar_lea.vmem %s997_s3, %s523_s20  ;;  %s723_s17 = sld [smem:[#allocation4 + $0x9]]  ;;  %v48_v28 = vld [vmem:[%s47_s6] sm:$0x1]  ;;  %v111_v30 = vsel %vm50_vm0, %v110_v22, 0.0 }
  0x30   :  { %103 = vadd.xlane.f32.xlu0 %v102_v26  ;;  %v118_v29 = vld [vmem:[%s117_s10] sm:$0x1]  ;;  %s155_s16 = scalar_lea.vmem %s997_s3, %s695_s0  ;;  %s729_s14 = sld [smem:[#allocation4 + $0x1]] }
  0x31   :  { %v732_v31 = vadd.f32 %v43_v25, %v39_v27  ;;  %v119_v32 = vmul.f32 %v118_v29, %v96_v18  ;;  %v156_v33 = vld [vmem:[%s155_s16] sm:$0x1]  ;;  %s174_s23 = scalar_lea.vmem %s996_s2, %s700_s29  ;;  %s738_s18 = sld [smem:[#allocation4 + $0x8]] }
  0x32   :  { %v157_v34 = vmul.f32 %v156_v33, %v672_v8  ;;  %v175_v35 = vld [vmem:[%s174_s23] sm:$0x1]  ;;  %s178_s25 = scalar_lea.vmem %s996_s2, %s706_s7  ;;  %s745_s22 = sld [smem:[#allocation4 + $0xa]] }
  0x33   :  { %v49_v36 = vmul.f32 %v48_v28, %v732_v31  ;;  %v179_v37 = vld [vmem:[%s178_s25] sm:$0x1]  ;;  %s183_s29 = scalar_lea.vmem %s996_s2, %s711_s9  ;;  %s752_s24 = sld [smem:[#allocation3 + $0x10]]  ;;  %v120_v41 = vsel %vm50_vm0, %v119_v32, 0.0 }
  0x34   :  { %112 = vadd.xlane.f32.xlu0 %v111_v30  ;;  %v180_v38 = vadd.f32 %v179_v37, %v175_v35  ;;  %v184_v39 = vld [vmem:[%s183_s29] sm:$0x1]  ;;  %s188_s7 = scalar_lea.vmem %s996_s2, %s717_s8  ;;  %s758_s26 = sld [smem:[#allocation3 + $0x11]]  ;;  %v158_v43 = vsel %vm50_vm0, %v157_v34, 0.0 }
  0x35   :  { %v51_v40 = vsel %vm50_vm0, %v49_v36, 0.0  ;;  %v189_v42 = vld [vmem:[%s188_s7] sm:$0x1]  ;;  %s193_s9 = scalar_lea.vmem %s997_s3, %s723_s17  ;;  %s766_s13 = sld [smem:[#allocation3 + $0x12]] }
  0x36   :  { %52 = vadd.xlane.f32.xlu1 %v51_v40  ;;  %v185_v44 = vadd.f32 %v184_v39, %v180_v38  ;;  %s58_s10 = scalar_lea.vmem %s997_s3, %s729_s14  ;;  %s773_s12 = sld [smem:[#allocation3 + $0x13]]  ;;  %v194_v45 = vld [vmem:[%s193_s9] sm:$0x1] }
  0x37   :  { %v59_v46 = vld [vmem:[%s58_s10] sm:$0x1]  ;;  %s164_s20 = scalar_lea.vmem %s997_s3, %s738_s18  ;;  %s779_s17 = sld [smem:[#allocation4 + $0xc]] }
  0x38   :  { %121 = vadd.xlane.f32.xlu0 %v120_v41  ;;  %v190_v47 = vadd.f32 %v189_v42, %v185_v44  ;;  %v60_v48 = vmul.f32 %v59_v46, %v732_v31  ;;  %v165_v49 = vld [vmem:[%s164_s20] sm:$0x1]  ;;  %s202_s14 = scalar_lea.vmem %s997_s3, %s745_s22  ;;  %s786_s0 = sld [smem:[#allocation4 + $0x2]] }
  0x39   :  { %v203_v50 = vld [vmem:[%s202_s14] sm:$0x1]  ;;  %s221_s18 = scalar_lea.vmem %s996_s2, %s752_s24  ;;  %s792_s30 = sld [smem:[#allocation4 + $0xb]]  ;;  %v166_v52 = vmul.f32 %v165_v49, %v672_v8 }
  0x3a   :  { %159 = vadd.xlane.f32.xlu1 %v158_v43  ;;  %v195_v51 = vmul.f32 %v194_v45, %v190_v47  ;;  %v204_v53 = vmul.f32 %v203_v50, %v190_v47  ;;  %v222_v54 = vld [vmem:[%s221_s18] sm:$0x1]  ;;  %s225_s22 = scalar_lea.vmem %s996_s2, %s758_s26  ;;  %s799_s27 = sld [smem:[#allocation4 + $0xd]]  ;;  %v61_v55 = vsel %vm50_vm0, %v60_v48, 0.0 }
  0x3b   :  { %v226_v56 = vld [vmem:[%s225_s22] sm:$0x1]  ;;  %s230_s7 = scalar_lea.vmem %s996_s2, %s766_s13  ;;  %s806_s11 = sld [smem:[#allocation3 + $0x14]]  ;;  %v167_v61 = vsel %vm50_vm0, %v166_v52, 0.0 }
  0x3c   :  { %v196_v57 = vsel %vm50_vm0, %v195_v51, 0.0  ;;  %v227_v58 = vadd.f32 %v226_v56, %v222_v54  ;;  %v231_v59 = vld [vmem:[%s230_s7] sm:$0x1]  ;;  %s235_s26 = scalar_lea.vmem %s996_s2, %s773_s12  ;;  %s813_s8 = sld [smem:[#allocation3 + $0x15]]  ;;  %v205_v62 = vsel %vm50_vm0, %v204_v53, 0.0 }
  0x3d   :  { %197 = vadd.xlane.f32.xlu0 %v196_v57  ;;  %v236_v60 = vld [vmem:[%s235_s26] sm:$0x1]  ;;  %s240_s13 = scalar_lea.vmem %s997_s3, %s779_s17  ;;  %s819_s19 = sld [smem:[#allocation3 + $0x16]] }
  0x3e   :  { %62 = vadd.xlane.f32.xlu1 %v61_v55  ;;  %v232_v63 = vadd.f32 %v231_v59, %v227_v58  ;;  %s68_s20 = scalar_lea.vmem %s997_s3, %s786_s0  ;;  %s827_s21 = sld [smem:[#allocation3 + $0x17]]  ;;  %v241_v0 = vld [vmem:[%s240_s13] sm:$0x1] }
  0x3f   :  { %v69_v1 = vld [vmem:[%s68_s20] sm:$0x1]  ;;  %s211_s17 = scalar_lea.vmem %s997_s3, %s792_s30  ;;  %s833_s1 = sld [smem:[#allocation4 + $0xf]] }
  0x40   :  { %v237_v2 = vadd.f32 %v236_v60, %v232_v63  ;;  %v70_v3 = vmul.f32 %v69_v1, %v732_v31  ;;  %v212_v4 = vld [vmem:[%s211_s17] sm:$0x1]  ;;  %s249_s0 = scalar_lea.vmem %s997_s3, %s799_s27  ;;  %s840_s5 = sld [smem:[#allocation4 + $0xe]] }
  0x41   :  { %168 = vadd.xlane.f32.xlu0 %v167_v61  ;;  %v250_v5 = vld [vmem:[%s249_s0] sm:$0x1]  ;;  %s268_s30 = scalar_lea.vmem %s996_s2, %s806_s11  ;;  %s846_s24 = sld [smem:[#allocation4 + $0x10]]  ;;  %v213_v7 = vmul.f32 %v212_v4, %v190_v47 }
  0x42   :  { %206 = vadd.xlane.f32.xlu1 %v205_v62  ;;  %v242_v6 = vmul.f32 %v241_v0, %v237_v2  ;;  %v251_v8 = vmul.f32 %v250_v5, %v237_v2  ;;  %v269_v9 = vld [vmem:[%s268_s30] sm:$0x1]  ;;  %s272_s27 = scalar_lea.vmem %s996_s2, %s813_s8  ;;  %s852_s6 = sld [smem:[#allocation3 + $0x18]]  ;;  %v71_v10 = vsel %vm50_vm0, %v70_v3, 0.0 }
  0x43   :  { %v273_v11 = vld [vmem:[%s272_s27] sm:$0x1]  ;;  %s277_s26 = scalar_lea.vmem %s996_s2, %s819_s19  ;;  %s859_s15 = sld [smem:[#allocation3 + $0x19]]  ;;  %v214_v16 = vsel %vm50_vm0, %v213_v7, 0.0 }
  0x44   :  { %v243_v12 = vsel %vm50_vm0, %v242_v6, 0.0  ;;  %v274_v13 = vadd.f32 %v273_v11, %v269_v9  ;;  %v278_v14 = vld [vmem:[%s277_s26] sm:$0x1]  ;;  %s282_s8 = scalar_lea.vmem %s996_s2, %s827_s21  ;;  %s866_s16 = sld [smem:[#allocation3 + $0x1a]]  ;;  %v252_v17 = vsel %vm50_vm0, %v251_v8, 0.0 }
  0x45   :  { %244 = vadd.xlane.f32.xlu0 %v243_v12  ;;  %v283_v15 = vld [vmem:[%s282_s8] sm:$0x1]  ;;  %s287_s19 = scalar_lea.vmem %s997_s3, %s833_s1  ;;  %s872_s23 = sld [smem:[#allocation3 + $0x1b]] }
  0x46   :  { %72 = vadd.xlane.f32.xlu1 %v71_v10  ;;  %v279_v18 = vadd.f32 %v278_v14, %v274_v13  ;;  %s258_s17 = scalar_lea.vmem %s997_s3, %s840_s5  ;;  %s880_s25 = sld [smem:[#allocation4 + $0x12]]  ;;  %v288_v19 = vld [vmem:[%s287_s19] sm:$0x1]  ;;  %v24_v13 = vlaneseq }
  0x47   :  { %v259_v20 = vld [vmem:[%s258_s17] sm:$0x1]  ;;  %s296_s1 = scalar_lea.vmem %s997_s3, %s846_s24  ;;  %s886_s29 = sld [smem:[#allocation4 + $0x11]] }
  0x48   :  { %v284_v21 = vadd.f32 %v283_v15, %v279_v18  ;;  %v260_v22 = vmul.f32 %v259_v20, %v237_v2  ;;  %v297_v23 = vld [vmem:[%s296_s1] sm:$0x1]  ;;  %s315_s28 = scalar_lea.vmem %s996_s2, %s852_s6  ;;  %s892_s5 = sld [smem:[#allocation4 + $0x13]] }
  0x49   :  { %215 = vadd.xlane.f32.xlu0 %v214_v16  ;;  %v316_v24 = vld [vmem:[%s315_s28] sm:$0x1]  ;;  %s319_s9 = scalar_lea.vmem %s996_s2, %s859_s15  ;;  %s898_s24 = sld [smem:[#allocation3 + $0x1c]]  ;;  %v25_v16 = vand.u32 127, %v24_v13 }
  0x4a   :  { %253 = vadd.xlane.f32.xlu1 %v252_v17  ;;  %v289_v25 = vmul.f32 %v288_v19, %v284_v21  ;;  %v298_v26 = vmul.f32 %v297_v23, %v284_v21  ;;  %v320_v27 = vld [vmem:[%s319_s9] sm:$0x1]  ;;  %s324_s6 = scalar_lea.vmem %s996_s2, %s866_s16  ;;  %s904_s10 = sld [smem:[#allocation3 + $0x1d]]  ;;  %v261_v28 = vsel %vm50_vm0, %v260_v22, 0.0 }
  0x4b   :  { %v321_v29 = vadd.f32 %v320_v27, %v316_v24  ;;  %v325_v30 = vld [vmem:[%s324_s6] sm:$0x1]  ;;  %s329_s8 = scalar_lea.vmem %s996_s2, %s872_s23  ;;  %s911_s12 = sld [smem:[#allocation3 + $0x1e]]  ;;  %vm54_vm1 = vcmp.eq.s32.totalorder %v25_v16, 0  ;;  %vm64_vm2 = vcmp.eq.s32.totalorder %v25_v16, 1  ;;  %vm74_vm3 = vcmp.eq.s32.totalorder %v25_v16, 2 }
  0x4c   :  { %v290_v31 = vsel %vm50_vm0, %v289_v25, 0.0  ;;  %v330_v32 = vld [vmem:[%s329_s8] sm:$0x1]  ;;  %s334_s16 = scalar_lea.vmem %s997_s3, %s880_s25  ;;  %s918_s14 = sld [smem:[#allocation3 + $0x1f]]  ;;  %v299_v33 = vsel %vm50_vm0, %v298_v26, 0.0 }
  0x4d   :  { %291 = vadd.xlane.f32.xlu0 %v290_v31  ;;  %v326_v34 = vadd.f32 %v325_v30, %v321_v29  ;;  %s305_s23 = scalar_lea.vmem %s997_s3, %s886_s29  ;;  %s925_s18 = sld [smem:[#allocation4 + $0x15]]  ;;  %v335_v35 = vld [vmem:[%s334_s16] sm:$0x1] }
  0x4e   :  { %262 = vadd.xlane.f32.xlu1 %v261_v28  ;;  %v306_v36 = vld [vmem:[%s305_s23] sm:$0x1]  ;;  %s343_s25 = scalar_lea.vmem %s997_s3, %s892_s5  ;;  %s558_s22 = sld [smem:[#allocation4 + $0x14]] }
  0x4f   :  { %v331_v37 = vadd.f32 %v330_v32, %v326_v34  ;;  %v307_v38 = vmul.f32 %v306_v36, %v284_v21  ;;  %v344_v39 = vld [vmem:[%s343_s25] sm:$0x1]  ;;  %s362_s7 = scalar_lea.vmem %s996_s2, %s898_s24  ;;  %s564_s29 = sld [smem:[#allocation4 + $0x16]] }
  0x50   :  { %v363_v40 = vld [vmem:[%s362_s7] sm:$0x1]  ;;  %s366_s11 = scalar_lea.vmem %s996_s2, %s904_s10  ;;  %s565_s26 = sld [smem:[#allocation4 + $0x17]] }
  0x51   :  { %300 = vadd.xlane.f32.xlu0 %v299_v33  ;;  %v336_v41 = vmul.f32 %v335_v35, %v331_v37  ;;  %v345_v42 = vmul.f32 %v344_v39, %v331_v37  ;;  %v367_v43 = vld [vmem:[%s366_s11] sm:$0x1]  ;;  %s371_s13 = scalar_lea.vmem %s996_s2, %s911_s12  ;;  %v308_v44 = vsel %vm50_vm0, %v307_v38, 0.0 }
  0x52   :  { %v368_v45 = vadd.f32 %v367_v43, %v363_v40  ;;  %v372_v46 = vld [vmem:[%s371_s13] sm:$0x1]  ;;  %s376_s8 = scalar_lea.vmem %s996_s2, %s918_s14 }
  0x53   :  { %v337_v47 = vsel %vm50_vm0, %v336_v41, 0.0  ;;  %v377_v48 = vld [vmem:[%s376_s8] sm:$0x1]  ;;  %s381_s19 = scalar_lea.vmem %s997_s3, %s925_s18  ;;  %v346_v50 = vsel %vm50_vm0, %v345_v42, 0.0 }
  0x54   :  { %338 = vadd.xlane.f32.xlu1 %v337_v47  ;;  %v373_v49 = vadd.f32 %v372_v46, %v368_v45  ;;  %s352_s12 = scalar_lea.vmem %s997_s3, %s558_s22  ;;  %v382_v51 = vld [vmem:[%s381_s19] sm:$0x1] }
  0x55   :  { %309 = vadd.xlane.f32.xlu0 %v308_v44  ;;  %v353_v52 = vld [vmem:[%s352_s12] sm:$0x1]  ;;  %s390_s14 = scalar_lea.vmem %s997_s3, %s564_s29 }
  0x56   :  { %v378_v53 = vadd.f32 %v377_v48, %v373_v49  ;;  %v354_v54 = vmul.f32 %v353_v52, %v331_v37  ;;  %v391_v55 = vld [vmem:[%s390_s14] sm:$0x1]  ;;  %s399_s0 = scalar_lea.vmem %s997_s3, %s565_s26  ;;  %s619_s3 = smov [#allocation5]  }
  0x57   :  { %v400_v56 = vld [vmem:[%s399_s0] sm:$0x1]  ;;  %s448_s1 = sshll.u32 %s619_s3, 4  ;;  %s449_s1 = int_to_ptr.vmem [resolvable:$true] %s448_s1 }
  0x58   :  { %347 = vadd.xlane.f32.xlu1 %v346_v50  ;;  %v383_v57 = vmul.f32 %v382_v51, %v378_v53  ;;  %v392_v58 = vmul.f32 %v391_v55, %v378_v53  ;;  %v355_v59 = vsel %vm50_vm0, %v354_v54, 0.0  ;;  %v401_v60 = vmul.f32 %v400_v56, %v378_v53  ;;  %s593_s25 = scalar_lea.vmem %s449_s1, 128  ;;  %p598_p11 = scmp.lt.s32.totalorder %s449_s1, %s449_s1 }
  0x59   :  { %p594_p10 = scmp.ne.s32.totalorder %s449_s1, %s593_s25  ;;  %p599_p12 = scmp.lt.s32.totalorder %s593_s25, %s593_s25 }
  0x5a   :  { %v384_v61 = vsel %vm50_vm0, %v383_v57, 0.0  ;;  %v393_v62 = vsel %vm50_vm0, %v392_v58, 0.0  ;;  %v402_v63 = vsel %vm50_vm0, %v401_v60, 0.0 }
  0x5b   :  { %385 = vadd.xlane.f32.xlu0 %v384_v61  ;;  %p600_p13 = por %p599_p12, %p598_p11 }
  0x5c   :  { %356 = vadd.xlane.f32.xlu1 %v355_v59 }
  0x5d   :  { %p601_p0 = pnand %p600_p13, %p594_p10 }
  0x5f   :  { %394 = vadd.xlane.f32.xlu0 %v393_v62 }
  0x60   :  { %403 = vadd.xlane.f32.xlu1 %v402_v63 }
  0xb4   :  { %v151_v0 = vpop.xlane.xlu1 %150 }
  0xb5   :  { %v152_v23 = vsel %vm54_vm1, %v151_v0, 0.0 }
  0xb9   :  { %v104_v1 = vpop.xlane.xlu0 %103 }
  0xba   :  { %v105_v20 = vsel %vm54_vm1, %v104_v1, 0.0 }
  0xbd   :  { %v113_v2 = vpop.xlane.xlu0 %112 }
  0xbe   :  { %v114_v22 = vsel %vm64_vm2, %v113_v2, %v105_v20 }
  0xbf   :  { %v53_v3 = vpop.xlane.xlu1 %52 }
  0xc0   :  { %v55_v24 = vsel %vm54_vm1, %v53_v3, 0.0 }
  0xc1   :  { %v122_v4 = vpop.xlane.xlu0 %121 }
  0xc2   :  { %v123_v25 = vsel %vm74_vm3, %v122_v4, %v114_v22 }
  0xc3   :  { %v160_v5 = vpop.xlane.xlu1 %159  ;;  %v407_v36 = vrot.slane %v123_v25, 7 }
  0xc4   :  { %v161_v27 = vsel %vm64_vm2, %v160_v5, %v152_v23 }
  0xc6   :  { %v198_v6 = vpop.xlane.xlu0 %197 }
  0xc7   :  { %v63_v7 = vpop.xlane.xlu1 %62  ;;  %v199_v26 = vsel %vm54_vm1, %v198_v6, 0.0 }
  0xc8   :  { %v65_v28 = vsel %vm64_vm2, %v63_v7, %v55_v24 }
  0xca   :  { %v169_v8 = vpop.xlane.xlu0 %168 }
  0xcb   :  { %v207_v9 = vpop.xlane.xlu1 %206  ;;  %v170_v37 = vsel %vm74_vm3, %v169_v8, %v161_v27 }
  0xcc   :  { %v208_v29 = vsel %vm64_vm2, %v207_v9, %v199_v26  ;;  %v410_v47 = vrot.slane %v170_v37, 6 }
  0xce   :  { %v245_v10 = vpop.xlane.xlu0 %244 }
  0xcf   :  { %v73_v11 = vpop.xlane.xlu1 %72  ;;  %v246_v30 = vsel %vm54_vm1, %v245_v10, 0.0 }
  0xd0   :  { %v75_v32 = vsel %vm74_vm3, %v73_v11, %v65_v28 }
  0xd1   :  { %v428_v43 = vsel %vm427_vm4, %v75_v32, %v407_v36 }
  0xd2   :  { %v216_v12 = vpop.xlane.xlu0 %215  ;;  %v430_v51 = vsel %vm429_vm5, %v428_v43, %v410_v47 }
  0xd3   :  { %v254_v14 = vpop.xlane.xlu1 %253  ;;  %v217_v33 = vsel %vm74_vm3, %v216_v12, %v208_v29 }
  0xd4   :  { %v255_v34 = vsel %vm64_vm2, %v254_v14, %v246_v30  ;;  %v413_v44 = vrot.slane %v217_v33, 5 }
  0xd6   :  { %v292_v15 = vpop.xlane.xlu0 %291  ;;  %v432_v55 = vsel %vm431_vm6, %v430_v51, %v413_v44 }
  0xd7   :  { %v263_v17 = vpop.xlane.xlu1 %262  ;;  %v293_v35 = vsel %vm54_vm1, %v292_v15, 0.0 }
  0xd8   :  { %v264_v38 = vsel %vm74_vm3, %v263_v17, %v255_v34 }
  0xd9   :  { %v416_v48 = vrot.slane %v264_v38, 4 }
  0xda   :  { %v301_v18 = vpop.xlane.xlu0 %300 }
  0xdb   :  { %v302_v39 = vsel %vm64_vm2, %v301_v18, %v293_v35  ;;  %v434_v58 = vsel %vm433_vm7, %v432_v55, %v416_v48 }
  0xdd   :  { %v339_v19 = vpop.xlane.xlu1 %338 }
  0xde   :  { %v310_v21 = vpop.xlane.xlu0 %309  ;;  %v340_v40 = vsel %vm54_vm1, %v339_v19, 0.0 }
  0xdf   :  { %v311_v41 = vsel %vm74_vm3, %v310_v21, %v302_v39 }
  0xe0   :  { %v419_v50 = vrot.slane %v311_v41, 3 }
  0xe1   :  { %v348_v31 = vpop.xlane.xlu1 %347 }
  0xe2   :  { %v349_v45 = vsel %vm64_vm2, %v348_v31, %v340_v40  ;;  %v436_v61 = vsel %vm435_vm8, %v434_v58, %v419_v50 }
  0xe4   :  { %v386_v42 = vpop.xlane.xlu0 %385 }
  0xe5   :  { %v357_v46 = vpop.xlane.xlu1 %356  ;;  %v387_v52 = vsel %vm54_vm1, %v386_v42, 0.0 }
  0xe6   :  { %v358_v49 = vsel %vm74_vm3, %v357_v46, %v349_v45 }
  0xe7   :  { %v422_v53 = vrot.slane %v358_v49, 2 }
  0xe8   :  { %v395_v54 = vpop.xlane.xlu0 %394 }
  0xe9   :  { %v396_v56 = vsel %vm64_vm2, %v395_v54, %v387_v52  ;;  %v404_v57 = vpop.xlane.xlu1 %403  ;;  %v438_v62 = vsel %vm437_vm9, %v436_v61, %v422_v53 }
  0xea   :  { %v405_v59 = vsel %vm74_vm3, %v404_v57, %v396_v56 }
  0xeb   :  { %v425_v60 = vrot.slane %v405_v59, 1 }
  0xed   :  { %v440_v63 = vsel %vm439_vm10, %v438_v62, %v425_v60 }
  0xee   :  { %441 = vst [vmem:[#allocation5] sm:$0xff] %v440_v63 }
  0xef   :  { %604 = shalt.err (!%p601_p0)
}
  0xf0   :  { %451 = dma.vmem_to_hbm [thread:$0]  %s449_s1, 128, %s998_s4, [#allocation6]  }
  0xf1   :  { %615 = dma.done.wait [#allocation6], 128  }
  0xf2   :  { %616 = vsyncadd [#allocation6], 4294967168 }
  0xf3   :  { %455 = vsyncpa [#allocation6], 1 }

</bundles_post_ra>
